<compile_context>
chip_gen: v6e
topology: v6e:2x2x1
jax: 0.10.0
libtpu: 0.0.40
codegen_flags: <defaults>
</compile_context>

<pallas_src>
import functools
import numpy as np

import jax
import jax.numpy as jnp
from jax import lax
from jax.experimental import pallas as pl
from jax.experimental.pallas import tpu as pltpu

BN_EPS = 1e-5


def _relu6(x):
    return jnp.clip(x, 0.0, 6.0)


# ---------------------------------------------------------------------------
# Kernel
# ---------------------------------------------------------------------------
def _inverted_residual_kernel(x_ref, *refs, has_expand, has_ds, use_res, W):
    # Unpack refs according to the statically-known configuration.
    i = 0
    if has_expand:
        w1_ref, b1_ref = refs[i], refs[i + 1]
        i += 2
    wdw_ref, b2_ref, mask_ref = refs[i], refs[i + 1], refs[i + 2]
    i += 3
    w3_ref, b3_ref = refs[i], refs[i + 1]
    i += 2
    if has_ds:
        ds_ref = refs[i]
        i += 1
    o_ref = refs[i]

    x = x_ref[0]                                    # (Cin, B_blk*HW) channel-major

    # ---- 1x1 expand conv (BN1 scale folded) + bias + ReLU6 (MXU, f32 acc) ----
    if has_expand:
        h = jnp.dot(w1_ref[...], x.astype(jnp.bfloat16),
                    preferred_element_type=jnp.float32)        # (hid, B*HW)
        h = _relu6(h + b1_ref[...])                 # (hid, 1) bias broadcast
    else:
        h = x                                       # hid == Cin

    # ---- 3x3 depthwise conv: 9 lane-rolled taps, masked MAC on the VPU ----
    # Tap MAC dtype comes from the wrapper (bf16 on v6e/v7x, f32 otherwise).
    dw_dtype = wdw_ref.dtype
    h = h.astype(dw_dtype)
    wdw = wdw_ref[...]                              # (hid, 9), BN2 scale folded
    masks = mask_ref[...]                           # (9, B*HW), 1.0 where valid
    bhw = h.shape[-1]

    acc = h * wdw[:, 4:5]                           # center tap: always valid
    for t in range(9):                              # static unroll over taps
        if t == 4:
            continue
        dh, dw = t // 3, t % 3
        off = (dh - 1) * W + (dw - 1)               # flattened source offset
        # out[:, i] = h[:, (i + off) mod B*HW]; invalid / cross-image wraps
        # hit positions where the mask is 0.
        shifted = pltpu.roll(h, (-off) % bhw, 1)
        acc = acc + (shifted * masks[t:t + 1, :]) * wdw[:, t:t + 1]

    # ---- stride-2: subsample the RAW accumulation first (pointwise ops
    # commute with column selection) so bias/ReLU6/cast touch 4x fewer lanes.
    if has_ds:
        acc = jnp.dot(acc.astype(jnp.bfloat16), ds_ref[...],
                      preferred_element_type=jnp.float32)      # (hid, B*HoWo)
    acc = _relu6(acc.astype(jnp.float32) + b2_ref[...])

    # ---- 1x1 project conv (BN3 folded) + bias (MXU, f32 acc) ----
    y = jnp.dot(w3_ref[...], acc.astype(jnp.bfloat16),
                preferred_element_type=jnp.float32)            # (oup, B*HoWo)
    y = y + b3_ref[...]

    if use_res:
        y = y + x                                   # stride==1 and Cin==oup

    o_ref[0] = y.astype(o_ref.dtype)


# ---------------------------------------------------------------------------
# Host-side helpers
# ---------------------------------------------------------------------------
def _make_tap_masks(H, W):
    """mask[t, h*W + w] = 1 iff source pixel (h+dh-1, w+dw-1) is in the image."""
    m = np.zeros((9, H * W), np.float32)
    for dh in range(3):
        for dw in range(3):
            t = dh * 3 + dw
            for h in range(H):
                hs = h + dh - 1
                if not (0 <= hs < H):
                    continue
                for w in range(W):
                    if 0 <= w + dw - 1 < W:
                        m[t, h * W + w] = 1.0
    return m


def _make_downsample(H, W, stride, Ho, Wo, n_img):
    """Block-diagonal 0/1 matrix picking stride-2 outputs for n_img fused images."""
    d1 = np.zeros((H * W, Ho * Wo), np.float32)
    for ho in range(Ho):
        for wo in range(Wo):
            d1[(stride * ho) * W + (stride * wo), ho * Wo + wo] = 1.0
    return np.kron(np.eye(n_img, dtype=np.float32), d1)


def _choose_blocking(n_images, hidden, hw):
    """Images per grid step: as many as fit a ~4 MiB f32 working set, while
    keeping >= 2 grid steps when possible (v7x has two TensorCores)."""
    cap = max(1, (4 << 20) // (hidden * hw * 4))
    b_blk = 1
    for b in range(1, n_images + 1):
        if n_images % b == 0 and b <= cap and (n_images // b >= 2 or n_images == 1):
            b_blk = b
    return n_images // b_blk, b_blk


def _bf16_tap_path_supported():
    """Probe-compile the bf16 roll / packed-slice patterns used by the tap loop."""
    def _probe(h_ref, m_ref, w_ref, o_ref):
        sh = pltpu.roll(h_ref[...], 17, 1)
        o_ref[...] = h_ref[...] * w_ref[:, 4:5] + (sh * m_ref[1:2, :]) * w_ref[:, 3:4]

    try:
        h = jnp.ones((8, 512), jnp.bfloat16)
        m = jnp.ones((9, 512), jnp.bfloat16)
        w = jnp.ones((8, 9), jnp.bfloat16)
        out = pl.pallas_call(
            _probe, out_shape=jax.ShapeDtypeStruct((8, 512), jnp.bfloat16))(h, m, w)
        jax.block_until_ready(out)
        return True
    except Exception:
        return False


_DW_DTYPE = None


def _dw_compute_dtype():
    """bf16 tap MAC on chips with a bf16 VALU (v6e/v7x); f32 on v5e and older."""
    global _DW_DTYPE
    if _DW_DTYPE is None:
        use_bf16 = True
        try:
            kind = jax.devices()[0].device_kind.lower()
            if any(v in kind for v in ("v2", "v3", "v4", "v5")):
                use_bf16 = False            # no bf16 VALU on these generations
        except Exception:
            use_bf16 = False
        if use_bf16:
            use_bf16 = _bf16_tap_path_supported()
        _DW_DTYPE = jnp.bfloat16 if use_bf16 else jnp.float32
    return _DW_DTYPE


def _bn_params(key, c):
    k1, k2, k3, k4 = jax.random.split(key, 4)
    gamma = 1.0 + 0.1 * jax.random.normal(k1, (c,), jnp.float32)
    beta = 0.1 * jax.random.normal(k2, (c,), jnp.float32)
    mean = 0.1 * jax.random.normal(k3, (c,), jnp.float32)
    var = 1.0 + 0.5 * jax.random.uniform(k4, (c,), jnp.float32)
    return gamma, beta, mean, var


def _fold_bn(gamma, beta, mean, var):
    scale = gamma / jnp.sqrt(var + BN_EPS)
    return scale, beta - mean * scale


def init_params(key, inp, oup, expand_ratio):
    hidden = int(round(inp * expand_ratio))
    ks = jax.random.split(key, 6)
    p = {}
    if expand_ratio != 1:
        p["w_expand"] = 0.3 * jax.random.normal(ks[0], (hidden, inp, 1, 1), jnp.float32)
        p["bn1"] = _bn_params(ks[1], hidden)
    p["w_dw"] = 0.3 * jax.random.normal(ks[2], (hidden, 1, 3, 3), jnp.float32)
    p["bn2"] = _bn_params(ks[3], hidden)
    p["w_proj"] = 0.3 * jax.random.normal(ks[4], (oup, hidden, 1, 1), jnp.float32)
    p["bn3"] = _bn_params(ks[5], oup)
    return p


# ---------------------------------------------------------------------------
# Wrapper
# ---------------------------------------------------------------------------
def inverted_residual(x_nchw, params, *, stride, expand_ratio):
    N, Cin, H, W = x_nchw.shape
    assert stride in (1, 2)
    has_expand = expand_ratio != 1
    hidden = int(round(Cin * expand_ratio))
    oup = params["w_proj"].shape[0]
    use_res = (stride == 1) and (Cin == oup)
    HW = H * W
    Ho = (H - 1) // stride + 1
    Wo = (W - 1) // stride + 1
    HoWo = Ho * Wo
    has_ds = stride != 1
    dw_dtype = _dw_compute_dtype()

    num_blocks, b_blk = _choose_blocking(N, hidden, HW)

    # Layout plumbing (cheap XLA ops): channel-major with b_blk images fused
    # into the lane axis.  For b_blk == 1 this is a pure reshape.
    x_k = (x_nchw.reshape(num_blocks, b_blk, Cin, HW)
           .transpose(0, 2, 1, 3)
           .reshape(num_blocks, Cin, b_blk * HW))

    ops = [x_k]
    in_specs = [pl.BlockSpec((1, Cin, b_blk * HW), lambda n: (n, 0, 0))]

    def add_full(arr):                              # grid-invariant 2-D operand
        ops.append(arr)
        in_specs.append(pl.BlockSpec(arr.shape, lambda n: (0, 0)))

    if has_expand:
        s1, b1 = _fold_bn(*params["bn1"])
        add_full((params["w_expand"][:, :, 0, 0] * s1[:, None]).astype(jnp.bfloat16))
        add_full(b1.reshape(hidden, 1).astype(jnp.float32))

    s2, b2 = _fold_bn(*params["bn2"])
    add_full((params["w_dw"].reshape(hidden, 9) * s2[:, None]).astype(dw_dtype))
    add_full(b2.reshape(hidden, 1).astype(jnp.float32))
    add_full(jnp.asarray(np.tile(_make_tap_masks(H, W), (1, b_blk))).astype(dw_dtype))

    s3, b3 = _fold_bn(*params["bn3"])
    add_full((params["w_proj"][:, :, 0, 0] * s3[:, None]).astype(jnp.bfloat16))
    add_full(b3.reshape(oup, 1).astype(jnp.float32))

    if has_ds:
        add_full(jnp.asarray(
            _make_downsample(H, W, stride, Ho, Wo, b_blk)).astype(jnp.bfloat16))

    kernel = functools.partial(_inverted_residual_kernel, has_expand=has_expand,
                               has_ds=has_ds, use_res=use_res, W=W)

    out = pl.pallas_call(
        kernel,
        out_shape=jax.ShapeDtypeStruct((num_blocks, oup, b_blk * HoWo), x_nchw.dtype),
        grid_spec=pltpu.PrefetchScalarGridSpec(
            num_scalar_prefetch=0,
            grid=(num_blocks,),
            in_specs=in_specs,
            out_specs=pl.BlockSpec((1, oup, b_blk * HoWo), lambda n: (n, 0, 0)),
        ),
        compiler_params=pltpu.CompilerParams(
            dimension_semantics=("parallel",),
            vmem_limit_bytes=32 * 1024 * 1024),
    )(*ops)

    return (out.reshape(num_blocks, oup, b_blk, Ho, Wo)
            .transpose(0, 2, 1, 3, 4)
            .reshape(N, oup, Ho, Wo))


# -------- pure-JAX reference (eval-mode BatchNorm), for verification --------
def _bn_ref(x, gamma, beta, mean, var):
    scale = (gamma / jnp.sqrt(var + BN_EPS)).reshape(1, -1, 1, 1)
    bias = (beta - mean * gamma / jnp.sqrt(var + BN_EPS)).reshape(1, -1, 1, 1)
    return x * scale + bias


def reference(x, params, *, stride, expand_ratio):
    Cin = x.shape[1]
    oup = params["w_proj"].shape[0]
    use_res = (stride == 1) and (Cin == oup)
    dn = ("NCHW", "OIHW", "NCHW")
    h = x
    if expand_ratio != 1:
        h = lax.conv_general_dilated(h, params["w_expand"], (1, 1), "VALID",
                                     dimension_numbers=dn)
        h = jnp.clip(_bn_ref(h, *params["bn1"]), 0.0, 6.0)
    hidden = params["w_dw"].shape[0]
    h = lax.conv_general_dilated(h, params["w_dw"], (stride, stride),
                                 ((1, 1), (1, 1)), dimension_numbers=dn,
                                 feature_group_count=hidden)
    h = jnp.clip(_bn_ref(h, *params["bn2"]), 0.0, 6.0)
    h = lax.conv_general_dilated(h, params["w_proj"], (1, 1), "VALID",
                                 dimension_numbers=dn)
    h = _bn_ref(h, *params["bn3"])
    return x + h if use_res else h


if __name__ == "__main__":
    key = jax.random.PRNGKey(0)
    N, H, W = 4, 16, 16                  # N=4 -> 2 grid steps x 2 fused images
    configs = [
        # (inp, oup, stride, expand_ratio)
        (8, 8, 1, 2),     # expand + residual
        (8, 16, 2, 2),    # expand + stride-2 (downsample path), no residual
        (8, 8, 1, 1),     # no expand (expand_ratio == 1) + residual
    ]
    for (inp, oup, stride, er) in configs:
        key, kx, kp = jax.random.split(key, 3)
        x = jax.random.normal(kx, (N, inp, H, W), jnp.float32)
        params = init_params(kp, inp, oup, er)

        out = inverted_residual(x, params, stride=stride, expand_ratio=er)
        out = jax.block_until_ready(out)

        ref = reference(x, params, stride=stride, expand_ratio=er)
        assert out.shape == ref.shape, (out.shape, ref.shape)
        if not jnp.allclose(out, ref, atol=1e-1, rtol=5e-2):
            err = float(jnp.max(jnp.abs(out - ref)))
            raise AssertionError(
                f"mismatch for cfg (inp={inp}, oup={oup}, stride={stride}, "
                f"expand={er}): max abs err = {err}")

    print("KERNEL_OK")
</pallas_src>

<mosaic_0001>
module attributes {stable_mosaic.version = 11 : i64} {
  func.func @_probe(%arg0: memref<8x512xbf16, #tpu.memory_space<vmem>>, %arg1: memref<9x512xbf16, #tpu.memory_space<vmem>>, %arg2: memref<8x9xbf16, #tpu.memory_space<vmem>>, %arg3: memref<8x512xbf16, #tpu.memory_space<vmem>>) attributes {dimension_semantics = [], scalar_prefetch = 0 : i64, scratch_operands = 0 : i64, tpu.core_type = #tpu.core_type<tc>} {
    %c0 = arith.constant 0 : index
    %c0_0 = arith.constant 0 : index
    %0 = vector.load %arg0[%c0, %c0_0] : memref<8x512xbf16, #tpu.memory_space<vmem>>, vector<8x512xbf16>
    %c17_i32 = arith.constant 17 : i32
    %1 = tpu.dynamic_rotate %0 by %c17_i32 dim 1 : vector<8x512xbf16>, i32 -> vector<8x512xbf16>
    %c0_1 = arith.constant 0 : index
    %c0_2 = arith.constant 0 : index
    %2 = vector.load %arg0[%c0_1, %c0_2] : memref<8x512xbf16, #tpu.memory_space<vmem>>, vector<8x512xbf16>
    %c0_3 = arith.constant 0 : index
    %c4 = arith.constant 4 : index
    %3 = vector.load %arg2[%c0_3, %c4] : memref<8x9xbf16, #tpu.memory_space<vmem>>, vector<8x1xbf16>
    %4 = vector.broadcast %3 : vector<8x1xbf16> to vector<8x512xbf16>
    %5 = arith.mulf %2, %4 : vector<8x512xbf16>
    %c1 = arith.constant 1 : index
    %c0_4 = arith.constant 0 : index
    %6 = vector.load %arg1[%c1, %c0_4] : memref<9x512xbf16, #tpu.memory_space<vmem>>, vector<1x512xbf16>
    %7 = vector.broadcast %6 : vector<1x512xbf16> to vector<8x512xbf16>
    %8 = arith.mulf %1, %7 : vector<8x512xbf16>
    %c0_5 = arith.constant 0 : index
    %c3 = arith.constant 3 : index
    %9 = vector.load %arg2[%c0_5, %c3] : memref<8x9xbf16, #tpu.memory_space<vmem>>, vector<8x1xbf16>
    %10 = vector.broadcast %9 : vector<8x1xbf16> to vector<8x512xbf16>
    %11 = arith.mulf %8, %10 : vector<8x512xbf16>
    %12 = arith.addf %5, %11 : vector<8x512xbf16>
    %c0_6 = arith.constant 0 : index
    %c0_7 = arith.constant 0 : index
    %13 = vector.load %arg3[%c0_6, %c0_7] : memref<8x512xbf16, #tpu.memory_space<vmem>>, vector<8x512xbf16>
    tpu.vector_store %arg3[%c0_6, %c0_7], %12 {strides = array<i32>} : memref<8x512xbf16, #tpu.memory_space<vmem>>, vector<8x512xbf16>,
    return
  }
}

module attributes {stable_mosaic.version = 11 : i64} {
  func.func @_inverted_residual_kernel(%arg0: i32, %arg1: memref<1x8x512xf32, #tpu.memory_space<vmem>>, %arg2: memref<16x8xbf16, #tpu.memory_space<vmem>>, %arg3: memref<16x1xf32, #tpu.memory_space<vmem>>, %arg4: memref<16x9xf32, #tpu.memory_space<vmem>>, %arg5: memref<16x1xf32, #tpu.memory_space<vmem>>, %arg6: memref<9x512xf32, #tpu.memory_space<vmem>>, %arg7: memref<8x16xbf16, #tpu.memory_space<vmem>>, %arg8: memref<8x1xf32, #tpu.memory_space<vmem>>, %arg9: memref<1x8x512xf32, #tpu.memory_space<vmem>>) attributes {dimension_semantics = [#tpu.dimension_semantics<parallel>], iteration_bounds = array<i64: 2>, scalar_prefetch = 0 : i64, scratch_operands = 0 : i64, tpu.core_type = #tpu.core_type<tc>, window_params = [{transform_indices = @transform_0, window_bounds = array<i64: 1, 8, 512>}, {pipeline_mode = #tpu.pipeline_mode<synchronous>, transform_indices = @transform_1, window_bounds = array<i64: 16, 8>}, {pipeline_mode = #tpu.pipeline_mode<synchronous>, transform_indices = @transform_2, window_bounds = array<i64: 16, 1>}, {pipeline_mode = #tpu.pipeline_mode<synchronous>, transform_indices = @transform_3, window_bounds = array<i64: 16, 9>}, {pipeline_mode = #tpu.pipeline_mode<synchronous>, transform_indices = @transform_4, window_bounds = array<i64: 16, 1>}, {pipeline_mode = #tpu.pipeline_mode<synchronous>, transform_indices = @transform_5, window_bounds = array<i64: 9, 512>}, {pipeline_mode = #tpu.pipeline_mode<synchronous>, transform_indices = @transform_6, window_bounds = array<i64: 8, 16>}, {pipeline_mode = #tpu.pipeline_mode<synchronous>, transform_indices = @transform_7, window_bounds = array<i64: 8, 1>}, {transform_indices = @transform_8, window_bounds = array<i64: 1, 8, 512>}]} {
    %c0 = arith.constant 0 : index
    %c0_0 = arith.constant 0 : index
    %c0_1 = arith.constant 0 : index
    %0 = vector.load %arg1[%c0, %c0_0, %c0_1] : memref<1x8x512xf32, #tpu.memory_space<vmem>>, vector<1x8x512xf32>
    %1 = vector.shape_cast %0 : vector<1x8x512xf32> to vector<8x512xf32>
    %c0_2 = arith.constant 0 : index
    %c0_3 = arith.constant 0 : index
    %2 = vector.load %arg2[%c0_2, %c0_3] : memref<16x8xbf16, #tpu.memory_space<vmem>>, vector<16x8xbf16>
    %3 = arith.truncf %1 : vector<8x512xf32> to vector<8x512xbf16>
    %cst = arith.constant dense<0.000000e+00> : vector<16x512xf32>
    %4 = tpu.matmul %2, %3, %cst {dimension_numbers = #tpu.dot_dimension_numbers<[1], [0], [0], [1], [0, 0, 1, 1], [], []>} : vector<16x8xbf16>, vector<8x512xbf16>, vector<16x512xf32> -> vector<16x512xf32>
    %c0_4 = arith.constant 0 : index
    %c0_5 = arith.constant 0 : index
    %5 = vector.load %arg3[%c0_4, %c0_5] : memref<16x1xf32, #tpu.memory_space<vmem>>, vector<16x1xf32>
    %6 = vector.broadcast %5 : vector<16x1xf32> to vector<16x512xf32>
    %7 = arith.addf %4, %6 : vector<16x512xf32>
    %cst_6 = arith.constant 0.000000e+00 : f32
    %cst_7 = arith.constant 6.000000e+00 : f32
    %8 = vector.broadcast %cst_6 : f32 to vector<16x512xf32>
    %9 = arith.maximumf %8, %7 : vector<16x512xf32>
    %10 = vector.broadcast %cst_7 : f32 to vector<16x512xf32>
    %11 = arith.minimumf %10, %9 : vector<16x512xf32>
    %c0_8 = arith.constant 0 : index
    %c0_9 = arith.constant 0 : index
    %12 = vector.load %arg4[%c0_8, %c0_9] : memref<16x9xf32, #tpu.memory_space<vmem>>, vector<16x9xf32>
    %c0_10 = arith.constant 0 : index
    %c0_11 = arith.constant 0 : index
    %13 = vector.load %arg6[%c0_10, %c0_11] : memref<9x512xf32, #tpu.memory_space<vmem>>, vector<9x512xf32>
    %14 = vector.extract_strided_slice %12 {offsets = [0, 4], sizes = [16, 1], strides = [1, 1]} : vector<16x9xf32> to vector<16x1xf32>
    %15 = vector.broadcast %14 : vector<16x1xf32> to vector<16x512xf32>
    %16 = arith.mulf %11, %15 : vector<16x512xf32>
    %c17_i32 = arith.constant 17 : i32
    %17 = tpu.dynamic_rotate %11 by %c17_i32 dim 1 : vector<16x512xf32>, i32 -> vector<16x512xf32>
    %18 = vector.extract_strided_slice %13 {offsets = [0, 0], sizes = [1, 512], strides = [1, 1]} : vector<9x512xf32> to vector<1x512xf32>
    %19 = vector.broadcast %18 : vector<1x512xf32> to vector<16x512xf32>
    %20 = arith.mulf %17, %19 : vector<16x512xf32>
    %21 = vector.extract_strided_slice %12 {offsets = [0, 0], sizes = [16, 1], strides = [1, 1]} : vector<16x9xf32> to vector<16x1xf32>
    %22 = vector.broadcast %21 : vector<16x1xf32> to vector<16x512xf32>
    %23 = arith.mulf %20, %22 : vector<16x512xf32>
    %24 = arith.addf %16, %23 : vector<16x512xf32>
    %c16_i32 = arith.constant 16 : i32
    %25 = tpu.dynamic_rotate %11 by %c16_i32 dim 1 : vector<16x512xf32>, i32 -> vector<16x512xf32>
    %26 = vector.extract_strided_slice %13 {offsets = [1, 0], sizes = [1, 512], strides = [1, 1]} : vector<9x512xf32> to vector<1x512xf32>
    %27 = vector.broadcast %26 : vector<1x512xf32> to vector<16x512xf32>
    %28 = arith.mulf %25, %27 : vector<16x512xf32>
    %29 = vector.extract_strided_slice %12 {offsets = [0, 1], sizes = [16, 1], strides = [1, 1]} : vector<16x9xf32> to vector<16x1xf32>
    %30 = vector.broadcast %29 : vector<16x1xf32> to vector<16x512xf32>
    %31 = arith.mulf %28, %30 : vector<16x512xf32>
    %32 = arith.addf %24, %31 : vector<16x512xf32>
    %c15_i32 = arith.constant 15 : i32
    %33 = tpu.dynamic_rotate %11 by %c15_i32 dim 1 : vector<16x512xf32>, i32 -> vector<16x512xf32>
    %34 = vector.extract_strided_slice %13 {offsets = [2, 0], sizes = [1, 512], strides = [1, 1]} : vector<9x512xf32> to vector<1x512xf32>
    %35 = vector.broadcast %34 : vector<1x512xf32> to vector<16x512xf32>
    %36 = arith.mulf %33, %35 : vector<16x512xf32>
    %37 = vector.extract_strided_slice %12 {offsets = [0, 2], sizes = [16, 1], strides = [1, 1]} : vector<16x9xf32> to vector<16x1xf32>
    %38 = vector.broadcast %37 : vector<16x1xf32> to vector<16x512xf32>
    %39 = arith.mulf %36, %38 : vector<16x512xf32>
    %40 = arith.addf %32, %39 : vector<16x512xf32>
    %c1_i32 = arith.constant 1 : i32
    %41 = tpu.dynamic_rotate %11 by %c1_i32 dim 1 : vector<16x512xf32>, i32 -> vector<16x512xf32>
    %42 = vector.extract_strided_slice %13 {offsets = [3, 0], sizes = [1, 512], strides = [1, 1]} : vector<9x512xf32> to vector<1x512xf32>
    %43 = vector.broadcast %42 : vector<1x512xf32> to vector<16x512xf32>
    %44 = arith.mulf %41, %43 : vector<16x512xf32>
    %45 = vector.extract_strided_slice %12 {offsets = [0, 3], sizes = [16, 1], strides = [1, 1]} : vector<16x9xf32> to vector<16x1xf32>
    %46 = vector.broadcast %45 : vector<16x1xf32> to vector<16x512xf32>
    %47 = arith.mulf %44, %46 : vector<16x512xf32>
    %48 = arith.addf %40, %47 : vector<16x512xf32>
    %c511_i32 = arith.constant 511 : i32
    %49 = tpu.dynamic_rotate %11 by %c511_i32 dim 1 : vector<16x512xf32>, i32 -> vector<16x512xf32>
    %50 = vector.extract_strided_slice %13 {offsets = [5, 0], sizes = [1, 512], strides = [1, 1]} : vector<9x512xf32> to vector<1x512xf32>
    %51 = vector.broadcast %50 : vector<1x512xf32> to vector<16x512xf32>
    %52 = arith.mulf %49, %51 : vector<16x512xf32>
    %53 = vector.extract_strided_slice %12 {offsets = [0, 5], sizes = [16, 1], strides = [1, 1]} : vector<16x9xf32> to vector<16x1xf32>
    %54 = vector.broadcast %53 : vector<16x1xf32> to vector<16x512xf32>
    %55 = arith.mulf %52, %54 : vector<16x512xf32>
    %56 = arith.addf %48, %55 : vector<16x512xf32>
    %c497_i32 = arith.constant 497 : i32
    %57 = tpu.dynamic_rotate %11 by %c497_i32 dim 1 : vector<16x512xf32>, i32 -> vector<16x512xf32>
    %58 = vector.extract_strided_slice %13 {offsets = [6, 0], sizes = [1, 512], strides = [1, 1]} : vector<9x512xf32> to vector<1x512xf32>
    %59 = vector.broadcast %58 : vector<1x512xf32> to vector<16x512xf32>
    %60 = arith.mulf %57, %59 : vector<16x512xf32>
    %61 = vector.extract_strided_slice %12 {offsets = [0, 6], sizes = [16, 1], strides = [1, 1]} : vector<16x9xf32> to vector<16x1xf32>
    %62 = vector.broadcast %61 : vector<16x1xf32> to vector<16x512xf32>
    %63 = arith.mulf %60, %62 : vector<16x512xf32>
    %64 = arith.addf %56, %63 : vector<16x512xf32>
    %c496_i32 = arith.constant 496 : i32
    %65 = tpu.dynamic_rotate %11 by %c496_i32 dim 1 : vector<16x512xf32>, i32 -> vector<16x512xf32>
    %66 = vector.extract_strided_slice %13 {offsets = [7, 0], sizes = [1, 512], strides = [1, 1]} : vector<9x512xf32> to vector<1x512xf32>
    %67 = vector.broadcast %66 : vector<1x512xf32> to vector<16x512xf32>
    %68 = arith.mulf %65, %67 : vector<16x512xf32>
    %69 = vector.extract_strided_slice %12 {offsets = [0, 7], sizes = [16, 1], strides = [1, 1]} : vector<16x9xf32> to vector<16x1xf32>
    %70 = vector.broadcast %69 : vector<16x1xf32> to vector<16x512xf32>
    %71 = arith.mulf %68, %70 : vector<16x512xf32>
    %72 = arith.addf %64, %71 : vector<16x512xf32>
    %c495_i32 = arith.constant 495 : i32
    %73 = tpu.dynamic_rotate %11 by %c495_i32 dim 1 : vector<16x512xf32>, i32 -> vector<16x512xf32>
    %74 = vector.extract_strided_slice %13 {offsets = [8, 0], sizes = [1, 512], strides = [1, 1]} : vector<9x512xf32> to vector<1x512xf32>
    %75 = vector.broadcast %74 : vector<1x512xf32> to vector<16x512xf32>
    %76 = arith.mulf %73, %75 : vector<16x512xf32>
    %77 = vector.extract_strided_slice %12 {offsets = [0, 8], sizes = [16, 1], strides = [1, 1]} : vector<16x9xf32> to vector<16x1xf32>
    %78 = vector.broadcast %77 : vector<16x1xf32> to vector<16x512xf32>
    %79 = arith.mulf %76, %78 : vector<16x512xf32>
    %80 = arith.addf %72, %79 : vector<16x512xf32>
    %c0_12 = arith.constant 0 : index
    %c0_13 = arith.constant 0 : index
    %81 = vector.load %arg5[%c0_12, %c0_13] : memref<16x1xf32, #tpu.memory_space<vmem>>, vector<16x1xf32>
    %82 = vector.broadcast %81 : vector<16x1xf32> to vector<16x512xf32>
    %83 = arith.addf %80, %82 : vector<16x512xf32>
    %cst_14 = arith.constant 0.000000e+00 : f32
    %cst_15 = arith.constant 6.000000e+00 : f32
    %84 = vector.broadcast %cst_14 : f32 to vector<16x512xf32>
    %85 = arith.maximumf %84, %83 : vector<16x512xf32>
    %86 = vector.broadcast %cst_15 : f32 to vector<16x512xf32>
    %87 = arith.minimumf %86, %85 : vector<16x512xf32>
    %c0_16 = arith.constant 0 : index
    %c0_17 = arith.constant 0 : index
    %88 = vector.load %arg7[%c0_16, %c0_17] : memref<8x16xbf16, #tpu.memory_space<vmem>>, vector<8x16xbf16>
    %89 = arith.truncf %87 : vector<16x512xf32> to vector<16x512xbf16>
    %cst_18 = arith.constant dense<0.000000e+00> : vector<8x512xf32>
    %90 = tpu.matmul %88, %89, %cst_18 {dimension_numbers = #tpu.dot_dimension_numbers<[1], [0], [0], [1], [0, 0, 1, 1], [], []>} : vector<8x16xbf16>, vector<16x512xbf16>, vector<8x512xf32> -> vector<8x512xf32>
    %c0_19 = arith.constant 0 : index
    %c0_20 = arith.constant 0 : index
    %91 = vector.load %arg8[%c0_19, %c0_20] : memref<8x1xf32, #tpu.memory_space<vmem>>, vector<8x1xf32>
    %92 = vector.broadcast %91 : vector<8x1xf32> to vector<8x512xf32>
    %93 = arith.addf %90, %92 : vector<8x512xf32>
    %94 = arith.addf %93, %1 : vector<8x512xf32>
    %c0_21 = arith.constant 0 : index
    %c0_22 = arith.constant 0 : index
    %c0_23 = arith.constant 0 : index
    %95 = vector.load %arg9[%c0_21, %c0_22, %c0_23] : memref<1x8x512xf32, #tpu.memory_space<vmem>>, vector<1x8x512xf32>
    %96 = vector.shape_cast %95 : vector<1x8x512xf32> to vector<8x512xf32>
    %97 = vector.shape_cast %94 : vector<8x512xf32> to vector<1x8x512xf32>
    tpu.vector_store %arg9[%c0_21, %c0_22, %c0_23], %97 {strides = array<i32>} : memref<1x8x512xf32, #tpu.memory_space<vmem>>, vector<1x8x512xf32>,
    return
  }
  func.func @transform_0(%arg0: i32) -> (i32, i32, i32) {
    %c0_i32 = arith.constant 0 : i32
    %c0_i32_0 = arith.constant 0 : i32
    %c0_i32_1 = arith.constant 0 : i32
    return %arg0, %c0_i32, %c0_i32_0 : i32, i32, i32
  }
  func.func @transform_1(%arg0: i32) -> (i32, i32) {
    %c0_i32 = arith.constant 0 : i32
    %c0_i32_0 = arith.constant 0 : i32
    %c0_i32_1 = arith.constant 0 : i32
    return %c0_i32, %c0_i32_0 : i32, i32
  }
  func.func @transform_2(%arg0: i32) -> (i32, i32) {
    %c0_i32 = arith.constant 0 : i32
    %c0_i32_0 = arith.constant 0 : i32
    %c0_i32_1 = arith.constant 0 : i32
    return %c0_i32, %c0_i32_0 : i32, i32
  }
  func.func @transform_3(%arg0: i32) -> (i32, i32) {
    %c0_i32 = arith.constant 0 : i32
    %c0_i32_0 = arith.constant 0 : i32
    %c0_i32_1 = arith.constant 0 : i32
    return %c0_i32, %c0_i32_0 : i32, i32
  }
  func.func @transform_4(%arg0: i32) -> (i32, i32) {
    %c0_i32 = arith.constant 0 : i32
    %c0_i32_0 = arith.constant 0 : i32
    %c0_i32_1 = arith.constant 0 : i32
    return %c0_i32, %c0_i32_0 : i32, i32
  }
  func.func @transform_5(%arg0: i32) -> (i32, i32) {
    %c0_i32 = arith.constant 0 : i32
    %c0_i32_0 = arith.constant 0 : i32
    %c0_i32_1 = arith.constant 0 : i32
    return %c0_i32, %c0_i32_0 : i32, i32
  }
  func.func @transform_6(%arg0: i32) -> (i32, i32) {
    %c0_i32 = arith.constant 0 : i32
    %c0_i32_0 = arith.constant 0 : i32
    %c0_i32_1 = arith.constant 0 : i32
    return %c0_i32, %c0_i32_0 : i32, i32
  }
  func.func @transform_7(%arg0: i32) -> (i32, i32) {
    %c0_i32 = arith.constant 0 : i32
    %c0_i32_0 = arith.constant 0 : i32
    %c0_i32_1 = arith.constant 0 : i32
    return %c0_i32, %c0_i32_0 : i32, i32
  }
  func.func @transform_8(%arg0: i32) -> (i32, i32, i32) {
    %c0_i32 = arith.constant 0 : i32
    %c0_i32_0 = arith.constant 0 : i32
    %c0_i32_1 = arith.constant 0 : i32
    return %arg0, %c0_i32, %c0_i32_0 : i32, i32, i32
  }
}

</mosaic_0001>

<bundles_post_ra>
// kernel: tpu_custom_call.1
= control target key start
LH: loop header
LB: loop body
LE: loop exit
PB: predicated region body
PF: predicated region fallthrough
CT: control target
= control target key end

     0   :  { %s2657_s0 = inlined_call_operand.hbm [shape: f32[2,8,512], index: 0, kind: input, shape index: {}]   ;;  %s2658_s1 = inlined_call_operand.vmem [shape: bf16[16,8], index: 1, kind: input, shape index: {}]   ;;  %s2659_s2 = inlined_call_operand.vmem [shape: f32[16,1], index: 2, kind: input, shape index: {}]   ;;  %s2660_s3 = inlined_call_operand.hbm [shape: f32[16,9], index: 3, kind: input, shape index: {}]   ;;  %s2661_s4 = inlined_call_operand.vmem [shape: f32[16,1], index: 4, kind: input, shape index: {}]   ;;  %s2662_s5 = inlined_call_operand.vmem [shape: f32[9,512], index: 5, kind: input, shape index: {}]   ;;  %s2663_s6 = inlined_call_operand.hbm [shape: bf16[8,16], index: 6, kind: input, shape index: {}]   ;;  %s2664_s7 = inlined_call_operand.vmem [shape: f32[8,1], index: 7, kind: input, shape index: {}]   ;;  %s2665_s8 = inlined_call_operand.hbm [shape: f32[2,8,512], index: 8, kind: output, shape index: {}]  }
   0x1   :  { %2695 = sst [smem:[#allocation40_spill]] %s2660_s3 }
   0x2   :  { %2696 = sst [smem:[#allocation41_spill]] %s2663_s6 }
   0x3   :  { %13 = vsyncpa [#allocation3], 0 }
   0x4   :  { %15 = vsyncpa [#allocation3 + $0x1], 0 }
   0x5   :  { %16 = vsyncpa [#allocation6], 0 }
   0x6   :  { %17 = vsyncpa [#allocation4], 0 }
   0x7   :  { %19 = vsyncpa [#allocation4 + $0x1], 0  ;;  %s1713_s27 = smov 0   ;;  %s1715_s28 = smov 0  }
   0x8   :  { %s1717_s29 = smov 0   ;;  %s1719_s30 = smov 0  }
   0x9 LB: > { %s1734_s9 = sadd.s32 4294967295, %s1643_s30   ;;  %s1355_s10 = sadd.s32 4294967294, %s1643_s30   ;;  %s1643_s30 = sphi %s1719_s30, %s2776_s30   ;;  %s1639_s29 = sphi %s1717_s29, %s2775_s29   ;;  %s1635_s28 = sphi %s1715_s28, %s2774_s28   ;;  %s1631_s27 = sphi %s1713_s27, %s2773_s27  }
   0xa   : > { %p45_p0 = scmp.ne.s32.totalorder %s1635_s28, %s1631_s27  ;;  %p2666_p1 = scmp.eq.s32.totalorder %s1734_s9, 0 }
   0xb   : > { %p222_p3 = scmp.eq.s32.totalorder %s1355_s10, 1  ;;  %p1356_p5 = scmp.ge.s32.totalorder %s1643_s30, 1 }
   0xc   : > { %p1743_p4 = por %p2666_p1, %p45_p0  ;;  %p229_p7 = scmp.lt.s32.totalorder %s1643_s30, 3 }
   0xd   : > { %p1748_p6 = por %p222_p3, %p45_p0  ;;  %s1645_s14 = smov [#allocation5]  }
   0xe   : > { %s2697_s11 = scalar_select %p1743_p4, 1, 0 }
   0xf   : > { %s2698_s12 = scalar_select %p1748_p6, 1, 0 }
  0x10   : > { %p1753_p8 = pnand %p1356_p5, %p229_p7  ;;  %s247_s15 = sshll.u32 %s1645_s14, 4  ;;  %s248_s15 = int_to_ptr.vmem [resolvable:$true] %s247_s15 }
  0x11   : > { %s1646_s17 = smov [#allocation7]   ;;  %s1506_s19 = scalar_lea.vmem %s248_s15, 256 }
  0x12   : > { %s2699_s13 = scalar_select %p1753_p8, 1, 0 }
  0x13   : > { %p1398_p9 = pneg %p1753_p8  ;;  %s267_s18 = sshll.u32 %s1646_s17, 4  ;;  %s268_s18 = int_to_ptr.vmem [resolvable:$true] %s267_s18 }
  0x14   : > { %p1507_p13 = scmp.ne.s32.totalorder %s248_s15, %s1506_s19  ;;  %p1514_p5 = scmp.lt.s32.totalorder %s248_s15, %s248_s15 }
  0x15   : > { %p1762_p11 = pnand %p1398_p9, %p2666_p1  ;;  %p1515_p7 = scmp.lt.s32.totalorder %s1506_s19, %s1506_s19 }
  0x17   : > { %p1497_p12 = pneg %p1762_p11  ;;  %p1516_p10 = por %p1515_p7, %p1514_p5 }
  0x19   : > { %p1509_p0 = pnand %p1507_p13, %p1497_p12 }
  0x1b   : > { %p1510_p3 = pneg %p1509_p0 }
  0x1d   : > { %p1517_p9 = pnand %p1516_p10, %p1510_p3 }
  0x1f   : > { %1520 = shalt.err (!%p1517_p9)
}
  0x20   : > { %s1647_s20 = smov 128   ;;  %s1648_s21 = smov 8  }
  0x21   : > { %s2701_s3 = sld [smem:[#allocation40_spill]]  ;;  %s1532_s24 = scalar_lea.vmem %s268_s18, 64 }
  0x22   : > { %p1533_p1 = scmp.ne.s32.totalorder %s268_s18, %s1532_s24  ;;  %p1540_p2 = scmp.lt.s32.totalorder %s268_s18, %s268_s18 }
  0x23   : > { %p1541_p6 = scmp.lt.s32.totalorder %s1532_s24, %s1532_s24 }
  0x24   : > { %p1535_p13 = pnand %p1533_p1, %p1497_p12 }
  0x25   : > { %p1542_p5 = por %p1541_p6, %p1540_p2 }
  0x26   : > { %p1536_p0 = pneg %p1535_p13 }
  0x27   : > { %1401 = dma.hbm_to_vmem [thread:$0]  (!%p1762_p11), %s2701_s3, 256, %s248_s15, [#allocation6], %s1647_s20, %s1647_s20, %s1648_s21  }
  0x28   : > { %p1543_p10 = pnand %p1542_p5, %p1536_p0 }
  0x2a   : > { %1546 = shalt.err (!%p1543_p10)
}
  0x2b   : > { %s2702_s6 = sld [smem:[#allocation41_spill]]  ;;  %s1785_s10 = sadd.s32 1, %s1643_s30  }
  0x2c   : > { %s32_s14 = sadd.s32 1, %s1639_s29  ;;  %s29_s15 = ssub.s32 %s1643_s30, %s1785_s10 }
  0x2d   : > { %p39_p1 = scmp.ne.s32.totalorder %s1639_s29, %s1635_s28  ;;  %p30_p2 = scmp.eq.s32.totalorder %s29_s15, 0 }
  0x2e   : > { %p40_p6 = scmp.eq.s32.totalorder %s1643_s30, 0  ;;  %p2703_p12 = scmp.eq.s32.totalorder %s1734_s9, 1 }
  0x2f   : > { %p1415_p7 = scmp.lt.s32.totalorder %s1643_s30, 2  ;;  %s281_s19 = sand.u32 1, %s1639_s29  }
  0x30   : > { %p1795_p3 = por %p2703_p12, %p39_p1  ;;  %p41_p9 = por %p40_p6, %p39_p1 }
  0x31   : > { %1404 = dma.hbm_to_vmem [thread:$0]  (!%p1762_p11), %s2702_s6, 64, %s268_s18, [#allocation6]  }
  0x32   : > { %s2704_s16 = scalar_select %p1795_p3, 1, 0 }
  0x33   : > { %s1801_s17 = scalar_select %p30_p2, %s1639_s29, %s32_s14  }
  0x34   : > { %s1360_s20 = sshll.u32 %s281_s19, 5  ;;  %s1384_s18 = sshll.u32 %s1643_s30, 9 }
  0x35   : > { %2705 = sst [smem:[#allocation12_spill]] %s1801_s17  ;;  %s1808_s23 = scalar_lea.hbm %s2657_s0, %s1384_s18 }
  0x36   : > { %s285_s24 = scalar_lea.vmem [#allocation2], %s1360_s20  ;;  %p1810_p11 = pnand %p1415_p7, %p41_p9 }
  0x37   : > { %s293_s25 = sshll.u32 %s285_s24, 4  ;;  %s282_s14 = scalar_lea.sflag [#allocation3], %s281_s19  ;;  %s294_s25 = int_to_ptr.vmem [resolvable:$true] %s293_s25 }
  0x38   : > { %s1547_s15 = scalar_lea.hbm %s1808_s23, 512  ;;  %p1549_p0 = pneg %p1810_p11 }
  0x39   : > { %p1548_p13 = scmp.ne.s32.totalorder %s1808_s23, %s1547_s15  ;;  %s1552_s22 = scalar_lea.hbm %s2657_s0, 1024 }
  0x3a   : > { %p1553_p1 = scmp.lt.s32.totalorder %s1808_s23, %s2657_s0  ;;  %p1554_p2 = scmp.lt.s32.totalorder %s1552_s22, %s1547_s15 }
  0x3b   : > { %p1550_p5 = pnand %p1549_p0, %p1548_p13 }
  0x3c   : > { %p1555_p6 = por %p1554_p2, %p1553_p1 }
  0x3d   : > { %p1551_p10 = pneg %p1550_p5 }
  0x3f   : > { %p1556_p12 = pnand %p1555_p6, %p1551_p10 }
  0x41   : > { %1559 = shalt.err (!%p1556_p12)
}
  0x42   : > { %s1560_s24 = scalar_lea.vmem %s294_s25, 512  ;;  %s1649_s19 = smov [#allocation2]  }
  0x43   : > { %p1561_p7 = scmp.ne.s32.totalorder %s294_s25, %s1560_s24  ;;  %s1565_s6 = sshll.u32 %s1649_s19, 4  ;;  %s1566_s6 = int_to_ptr.vmem [resolvable:$false] %s1565_s6 }
  0x44   : > { %s1567_s17 = scalar_lea.vmem %s1566_s6, 1024  ;;  %p1568_p13 = scmp.lt.s32.totalorder %s294_s25, %s1566_s6 }
  0x45   : > { %p1563_p9 = pnand %p1561_p7, %p1549_p0  ;;  %p1569_p5 = scmp.lt.s32.totalorder %s1567_s17, %s1560_s24 }
  0x47   : > { %p1564_p3 = pneg %p1563_p9  ;;  %p1570_p4 = por %p1569_p5, %p1568_p13 }
  0x49   : > { %p1571_p8 = pnand %p1570_p4, %p1564_p3 }
  0x4b   : > { %1574 = shalt.err (!%p1571_p8)
}
  0x4c   : > { %1408 = dma.hbm_to_vmem [thread:$0]  (!%p1810_p11), %s1808_s23, 512, %s294_s25, %s282_s14  }
  0x4d   : > { %p2707_p10 = scmp.ne.s32.totalorder %s2699_s13, 0 }
  0x4f   : > { %302 = sbr.rel (%p2707_p10) target bundleno = 786 (0x312), region = 52 }
  0x54   : > { %s1831_s3 = sand.u32 1, %s1635_s28   ;;  %p2708_p4 = scmp.ne.s32.totalorder %s2697_s11, 0 }
  0x55   : > { %s1364_s15 = sshll.u32 %s1831_s3, 5  ;;  %s305_s6 = scalar_lea.sflag [#allocation3], %s1831_s3 }
  0x56   : > { %s1837_s17 = scalar_lea.vmem [#allocation2], %s1364_s15 }
  0x57   : > { %1618 = dma.done.wait (%p2708_p4), %s305_s6, 512  }
  0x58   : > { %1620 = vsyncadd (%p2708_p4), %s305_s6, 4294966784  ;;  %p2709_p8 = scmp.eq.s32.totalorder %s1734_s9, 0 }
  0x5a   : > { %1622 = dma.done.wait (%p2709_p8), [#allocation6], 320   ;;  %p2710_p3 = pmov %p2709_p8 }
  0x5b   : > { %v1650_v0 = vmov 0   ;;  %v1651_v1 = vmov 1   ;;  %v1652_v2 = vmov 4   ;;  %v351_v3 = vld [vmem:[%s1837_s17 + $0x8] sm:$0xff]  ;;  %vm381_vm0 = vcmask 1043456   ;;  %v353_v4 = vld [vmem:[%s1837_s17 + $0x18] sm:$0xff] }
  0x5c   : > { %1624 = vsyncadd (%p2710_p3), [#allocation6], 4294966976  ;;  %426 = vmatprep.mubr.bf16.mxu0 %v1650_v0  ;;  %469 = vmatprep.mubr.bf16.mxu1 %v1650_v0  ;;  %v350_v5 = vld [vmem:[%s1837_s17] sm:$0xff]  ;;  %v357_v6 = vpack.c.bf16 %v351_v3, %v351_v3  ;;  %v359_v7 = vpack.c.bf16 %v353_v4, %v353_v4  ;;  %v352_v9 = vld [vmem:[%s1837_s17 + $0x10] sm:$0xff]  ;;  %vm377_vm1 = vcmask 64512   ;;  %v1653_v16 = vmov 2  }
  0x5d   : > { %1474 = vset.pattern.permute.xlu0 %v1651_v1  ;;  %1472 = vset.pattern.permute.xlu1 %v1652_v2  ;;  %v356_v8 = vpack.c.bf16 %v350_v5, %v350_v5  ;;  %v358_v10 = vpack.c.bf16 %v352_v9, %v352_v9  ;;  %v496_v11 = vld [vmem:[#allocation5] sm:$0xff]  ;;  %v497_v15 = vld [vmem:[#allocation5 + $0x8] sm:$0xff]  ;;  %v1654_v17 = vmov 3   ;;  %v1655_v18 = vmov 5   ;;  %s1659_s18 = smov 16   ;;  %s1660_s21 = smov 17  }
  0x5e   : > { %1369 = vmatprep.subr.msk.bf16.mxu0 %vm381_vm0, %v357_v6  ;;  %1371 = vmatprep.subr.msk.bf16.mxu1 %vm381_vm0, %v359_v7  ;;  %v1490_v13 = vld [vmem:[%s2658_s1] sm:$0xff]   ;;  %v1656_v19 = vmov 6   ;;  %v1657_v20 = vmov 7   ;;  %v1658_v21 = vmov 8   ;;  %v361_v23 = vld [vmem:[%s2659_s2 + $0x8] sm:$0xff]  ;;  %s1661_s22 = smov 15  }
  0x5f   : > { %v383_v12 = vsel %vm381_vm0, %v356_v8, 0  ;;  %v389_v14 = vsel %vm381_vm0, %v358_v10, 0  ;;  %649 = vperm.xlu0 %1474, %v496_v11   ;;  %508 = vperm.xlu1 %1472, %v496_v11   ;;  %v360_v22 = vld [vmem:[%s2659_s2] sm:$0xff]  ;;  %s1662_s20 = smov 1   ;;  %s1663_s24 = smov 127   ;;  %vm1157_vm10 = vcmask 130048  }
  0x60   : > { %409 = vmatpush1.bf16.msra.mxu0 %v383_v12  ;;  %452 = vmatpush1.bf16.msra.mxu1 %v389_v14  ;;  %s1664_s19 = smov 112   ;;  %s1665_s6 = smov 113   ;;  %v1111_v12 = vld [vmem:[%s2661_s4 + $0x8] sm:$0xff] }
  0x61   : > { %s1666_s11 = smov 111   ;;  %s1252_s13 = scalar_lea.sflag [#allocation4], %s1831_s3 }
  0x62   : > { %p2769_p0 = scmp.ne.s32.totalorder %s2704_s16, 0 }
  0x63   : > { %1370 = vmatmul.mubr.msk.bf16.vlgmr.msra.gmra.mxu0 %vm377_vm1, %v1490_v13  ;;  %1372 = vmatmul.mubr.msk.bf16.vlgmr.msra.gmra.mxu1 %vm377_vm1, %v1490_v13 }
  0x64   : > { %1477 = vset.pattern.permute.xlu0 %v1653_v16  ;;  %513 = vperm.xlu1 %1472, %v497_v15  }
  0x65   : > { %726 = vperm.xlu0 %1477, %v497_v15   ;;  %1193 = vmatprep.mubr.bf16.mxu0 %v1650_v0 }
  0x66   : > { %1234 = vmatprep.mubr.bf16.mxu1 %v1650_v0 }
  0x68   : > { %1473 = vset.pattern.permute.xlu1 %v1650_v0 }
  0x69   : > { %1478 = vset.pattern.permute.xlu0 %v1654_v17  ;;  %580 = vperm.xlu1 %1473, %v497_v15  }
  0x6a   : > { %795 = vperm.xlu0 %1478, %v496_v11  }
  0x6d   : > { %1475 = vset.pattern.permute.xlu1 %v1651_v1 }
  0x6e   : > { %1481 = vset.pattern.permute.xlu0 %v1655_v18  ;;  %653 = vperm.xlu1 %1475, %v497_v15  }
  0x6f   : > { %872 = vperm.xlu0 %1481, %v497_v15  }
  0x72   : > { %1476 = vset.pattern.permute.xlu1 %v1653_v16 }
  0x73   : > { %1482 = vset.pattern.permute.xlu0 %v1656_v19  ;;  %722 = vperm.xlu1 %1476, %v496_v11  }
  0x74   : > { %941 = vperm.xlu0 %1482, %v496_v11  }
  0x77   : > { %1479 = vset.pattern.permute.xlu1 %v1654_v17  ;;  %v540_v17 = vlaneseq }
  0x78   : > { %1485 = vset.pattern.permute.xlu0 %v1657_v20  ;;  %799 = vperm.xlu1 %1479, %v497_v15  }
  0x79   : > { %1018 = vperm.xlu0 %1485, %v497_v15  }
  0x7c   : > { %1480 = vset.pattern.permute.xlu1 %v1655_v18 }
  0x7d   : > { %1486 = vset.pattern.permute.xlu0 %v1658_v21  ;;  %868 = vperm.xlu1 %1480, %v496_v11  }
  0x7e   : > { %1087 = vperm.xlu0 %1486, %v496_v11  }
  0x81   : > { %1483 = vset.pattern.permute.xlu1 %v1656_v19 }
  0x82   : > { %1487 = vset.pattern.permute.xlu0 %v1650_v0  ;;  %945 = vperm.xlu1 %1483, %v497_v15  }
  0x83   : > { %364 = vperm.xlu0 %1487, %v360_v22  }
  0x86   : > { %1484 = vset.pattern.permute.xlu1 %v1657_v20  ;;  %v2046_v20 = vshrl.u32 %v540_v17, 7 }
  0x87   : > { %369 = vperm.xlu0 %1487, %v361_v23   ;;  %1014 = vperm.xlu1 %1484, %v496_v11   ;;  %v2054_v23 = vand.u32 127, %v540_v17 }
  0x89   : > { %vm542_vm2 = vcmp.lt.s32.totalorder %v2054_v23, 17  ;;  %vm688_vm3 = vcmp.lt.s32.totalorder %v2054_v23, 15  ;;  %vm834_vm4 = vcmp.lt.s32.totalorder %v2054_v23, 127  ;;  %vm615_vm5 = vcmp.lt.s32.totalorder %v2054_v23, 16 }
  0x8a   : > { %vm980_vm6 = vcmp.lt.s32.totalorder %v2054_v23, 112  ;;  %vm761_vm7 = vcmp.lt.s32.totalorder %v2054_v23, 1  ;;  %vm907_vm8 = vcmp.lt.s32.totalorder %v2054_v23, 113  ;;  %vm1053_vm9 = vcmp.lt.s32.totalorder %v2054_v23, 111 }
  0x8b   : > { %576 = vperm.xlu0 %1487, %v496_v11   ;;  %1488 = vset.pattern.permute.xlu1 %v1658_v21 }
  0x8c   : > { %1091 = vperm.xlu1 %1488, %v497_v15  }
  0x90   : > { %1489 = vset.pattern.permute.xlu1 %v1650_v0 }
  0xda   : > { %v1867_v24 = vpop.permute.xlu0 %649  ;;  %v1949_v57 = vpop.permute.xlu1 %508 }
  0xdf   : > { %v1959_v58 = vpop.permute.xlu1 %513 }
  0xe0   : > { %v1869_v25 = vpop.permute.xlu0 %726  ;;  %2717 = vst [vmem:[#allocation19_spill] sm:$0xff] %v1959_v58 }
  0xe1   : > { %2711 = vst [vmem:[#allocation13_spill] sm:$0xff] %v1869_v25 }
  0xe4   : > { %v1965_v59 = vpop.permute.xlu1 %580 }
  0xe5   : > { %v1871_v26 = vpop.permute.xlu0 %795  ;;  %2718 = vst [vmem:[#allocation20_spill] sm:$0xff] %v1965_v59 }
  0xe9   : > { %v1975_v61 = vpop.permute.xlu1 %653 }
  0xea   : > { %v1873_v27 = vpop.permute.xlu0 %872  ;;  %2719 = vst [vmem:[#allocation21_spill] sm:$0xff] %v1975_v61 }
  0xeb   : > { %2712 = vst [vmem:[#allocation14_spill] sm:$0xff] %v1873_v27 }
  0xee   : > { %v1981_v2 = vpop.permute.xlu1 %722 }
  0xef   : > { %v1875_v28 = vpop.permute.xlu0 %941 }
  0xf3   : > { %v1993_v5 = vpop.permute.xlu1 %799 }
  0xf4   : > { %v1877_v29 = vpop.permute.xlu0 %1018  ;;  %2721 = vst [vmem:[#allocation23_spill] sm:$0xff] %v1993_v5 }
  0xf5   : > { %2713 = vst [vmem:[#allocation15_spill] sm:$0xff] %v1877_v29 }
  0xf8   : > { %v2001_v7 = vpop.permute.xlu1 %868 }
  0xf9   : > { %v1879_v30 = vpop.permute.xlu0 %1087 }
  0xfa   : > { %2714 = vst [vmem:[#allocation16_spill] sm:$0xff] %v1879_v30 }
  0xfd   : > { %v2011_v8 = vpop.permute.xlu1 %945 }
  0xfe   : > { %v365_v31 = vpop.permute.xlu0 %364  ;;  %2723 = vst [vmem:[#allocation25_spill] sm:$0xff] %v2011_v8 }
 0x102   : > { %v370_v49 = vpop.permute.xlu0 %369  ;;  %v2017_v9 = vpop.permute.xlu1 %1014 }
 0x106   : > { %v577_v11 = vpop.permute.xlu0 %576 }
 0x107   : > { %v2027_v10 = vpop.permute.xlu1 %1091 }
 0x108   : > { %2724 = vst [vmem:[#allocation26_spill] sm:$0xff] %v2027_v10 }
 0x123   : > { %v428_v32 = vpop.f32.mrf.mxu0  ;;  %v471_v34 = vpop.f32.mrf.mxu1 }
 0x124   : > { %v429_v33 = vadd.f32 %v428_v32, %v365_v31  ;;  %v472_v35 = vadd.f32 %v471_v34, %v365_v31  ;;  %v2060_v32 = vld [vmem:[%s2662_s5 + $0x8] sm:$0xff] }
 0x125   : > { %v430_v40 = vpop.f32.mrf.mxu0  ;;  %v473_v42 = vpop.f32.mrf.mxu1 }
 0x126   : > { %v480_v36 = vmax.f32 %v429_v33, 0.0  ;;  %v482_v38 = vmax.f32 %v472_v35, 0.0  ;;  %v431_v41 = vadd.f32 %v430_v40, %v365_v31  ;;  %v474_v44 = vadd.f32 %v473_v42, %v365_v31  ;;  %v2065_v33 = vld [vmem:[%s2662_s5 + $0x10] sm:$0xff]  ;;  %v2083_v40 = vld [vmem:[%s2662_s5] sm:$0xff] }
 0x127   : > { %v432_v48 = vpop.f32.mrf.mxu0  ;;  %v475_v51 = vpop.f32.mrf.mxu1  ;;  %v553_v31 = vsub.s32 0, %v2046_v20 }
 0x128   : > { %v1881_v37 = vmin.f32 %v480_v36, 6.0  ;;  %v1887_v39 = vmin.f32 %v482_v38, 6.0  ;;  %v481_v43 = vmax.f32 %v431_v41, 0.0  ;;  %v483_v46 = vmax.f32 %v474_v44, 0.0  ;;  %v2088_v41 = vld [vmem:[%s2662_s5 + $0x18] sm:$0xff] }
 0x129   : > { %v433_v50 = vadd.f32 %v432_v48, %v370_v49  ;;  %v476_v53 = vadd.f32 %v475_v51, %v370_v49  ;;  %v434_v60 = vpop.f32.mrf.mxu0  ;;  %v477_v63 = vpop.f32.mrf.mxu1  ;;  %v2075_v36 = vrot.slane %v2060_v32, %v553_v31  ;;  %v2078_v38 = vrot.slane %v2065_v33, %v553_v31 }
 0x12a   : > { %599 = vrot.lane.b32.xlu1 %v1881_v37, %s1659_s18  ;;  %524 = vrot.lane.b32.xlu0 %v1881_v37, %s1660_s21  ;;  %v1905_v45 = vmin.f32 %v481_v43, 6.0  ;;  %v1911_v47 = vmin.f32 %v483_v46, 6.0  ;;  %v435_v62 = vadd.f32 %v434_v60, %v370_v49  ;;  %v478_v1 = vadd.f32 %v477_v63, %v370_v49 }
 0x12b   : > { %v484_v52 = vmax.f32 %v433_v50, 0.0  ;;  %v486_v55 = vmax.f32 %v476_v53, 0.0  ;;  %2725 = vst [vmem:[#allocation27_spill] sm:$0xff] %v2075_v36  ;;  %2726 = vst [vmem:[#allocation28_spill] sm:$0xff] %v2078_v38  ;;  %v2099_v50 = vrot.slane %v2083_v40, %v553_v31  ;;  %v2102_v51 = vrot.slane %v2088_v41, %v553_v31 }
 0x12c   : > { %v485_v0 = vmax.f32 %v435_v62, 0.0  ;;  %v487_v4 = vmax.f32 %v478_v1, 0.0  ;;  %v518_v53 = vmul.f32 %v1949_v57, %v1887_v39  ;;  %v516_v31 = vmul.f32 %v1949_v57, %v1881_v37 }
 0x12d   : > { %v1941_v54 = vmin.f32 %v484_v52, 6.0  ;;  %v1947_v56 = vmin.f32 %v486_v55, 6.0  ;;  %2727 = vst [vmem:[#allocation29_spill] sm:$0xff] %v2099_v50  ;;  %2728 = vst [vmem:[#allocation30_spill] sm:$0xff] %v2102_v51  ;;  %v1110_v52 = vld [vmem:[%s2661_s4] sm:$0xff] }
 0x12e   : > { %607 = vrot.lane.b32.xlu1 %v1887_v39, %s1659_s18  ;;  %532 = vrot.lane.b32.xlu0 %v1887_v39, %s1660_s21  ;;  %v1987_v3 = vmin.f32 %v485_v0, 6.0  ;;  %v1995_v6 = vmin.f32 %v487_v4, 6.0 }
 0x12f   : > { %2715 = vst [vmem:[#allocation17_spill] sm:$0xff] %v1941_v54  ;;  %2716 = vst [vmem:[#allocation18_spill] sm:$0xff] %v1947_v56 }
 0x130   : > { %2720 = vst [vmem:[#allocation22_spill] sm:$0xff] %v1987_v3  ;;  %2722 = vst [vmem:[#allocation24_spill] sm:$0xff] %v1995_v6 }
 0x132   : > { %672 = vrot.lane.b32.xlu1 %v1881_v37, %s1661_s22  ;;  %680 = vrot.lane.b32.xlu0 %v1887_v39, %s1661_s22 }
 0x136   : > { %745 = vrot.lane.b32.xlu1 %v1881_v37, %s1662_s20  ;;  %826 = vrot.lane.b32.xlu0 %v1887_v39, %s1663_s24 }
 0x13a   : > { %753 = vrot.lane.b32.xlu1 %v1887_v39, %s1662_s20  ;;  %972 = vrot.lane.b32.xlu0 %v1887_v39, %s1664_s19 }
 0x13e   : > { %818 = vrot.lane.b32.xlu1 %v1881_v37, %s1663_s24  ;;  %528 = vrot.lane.b32.xlu0 %v1905_v45, %s1660_s21 }
 0x142   : > { %891 = vrot.lane.b32.xlu1 %v1881_v37, %s1665_s6  ;;  %536 = vrot.lane.b32.xlu0 %v1911_v47, %s1660_s21 }
 0x146   : > { %899 = vrot.lane.b32.xlu1 %v1887_v39, %s1665_s6  ;;  %676 = vrot.lane.b32.xlu0 %v1905_v45, %s1661_s22 }
 0x14a   : > { %964 = vrot.lane.b32.xlu1 %v1881_v37, %s1664_s19  ;;  %684 = vrot.lane.b32.xlu0 %v1911_v47, %s1661_s22 }
 0x14e   : > { %1037 = vrot.lane.b32.xlu1 %v1881_v37, %s1666_s11  ;;  %822 = vrot.lane.b32.xlu0 %v1905_v45, %s1663_s24 }
 0x152   : > { %1045 = vrot.lane.b32.xlu1 %v1887_v39, %s1666_s11  ;;  %830 = vrot.lane.b32.xlu0 %v1911_v47, %s1663_s24  ;;  %v1151_v39 = vld [vmem:[%s2664_s7] sm:$0xff] }
 0x156   : > { %603 = vrot.lane.b32.xlu1 %v1905_v45, %s1659_s18  ;;  %968 = vrot.lane.b32.xlu0 %v1905_v45, %s1664_s19 }
 0x15a   : > { %611 = vrot.lane.b32.xlu1 %v1911_v47, %s1659_s18  ;;  %976 = vrot.lane.b32.xlu0 %v1911_v47, %s1664_s19 }
 0x15e   : > { %749 = vrot.lane.b32.xlu1 %v1905_v45, %s1662_s20  ;;  %601 = vrot.lane.b32.xlu0 %v1941_v54, %s1659_s18 }
 0x162   : > { %757 = vrot.lane.b32.xlu1 %v1911_v47, %s1662_s20  ;;  %609 = vrot.lane.b32.xlu0 %v1947_v56, %s1659_s18 }
 0x166   : > { %895 = vrot.lane.b32.xlu1 %v1905_v45, %s1665_s6  ;;  %747 = vrot.lane.b32.xlu0 %v1941_v54, %s1662_s20 }
 0x16a   : > { %903 = vrot.lane.b32.xlu1 %v1911_v47, %s1665_s6  ;;  %755 = vrot.lane.b32.xlu0 %v1947_v56, %s1662_s20 }
 0x16e   : > { %1041 = vrot.lane.b32.xlu1 %v1905_v45, %s1666_s11  ;;  %893 = vrot.lane.b32.xlu0 %v1941_v54, %s1665_s6 }
 0x172   : > { %1049 = vrot.lane.b32.xlu1 %v1911_v47, %s1666_s11  ;;  %901 = vrot.lane.b32.xlu0 %v1947_v56, %s1665_s6 }
 0x176   : > { %526 = vrot.lane.b32.xlu1 %v1941_v54, %s1660_s21  ;;  %1039 = vrot.lane.b32.xlu0 %v1941_v54, %s1666_s11 }
 0x17a   : > { %534 = vrot.lane.b32.xlu1 %v1947_v56, %s1660_s21  ;;  %1047 = vrot.lane.b32.xlu0 %v1947_v56, %s1666_s11 }
 0x17e   : > { %674 = vrot.lane.b32.xlu1 %v1941_v54, %s1661_s22  ;;  %605 = vrot.lane.b32.xlu0 %v1987_v3, %s1659_s18 }
 0x182   : > { %682 = vrot.lane.b32.xlu1 %v1947_v56, %s1661_s22  ;;  %613 = vrot.lane.b32.xlu0 %v1995_v6, %s1659_s18 }
 0x186   : > { %820 = vrot.lane.b32.xlu1 %v1941_v54, %s1663_s24  ;;  %751 = vrot.lane.b32.xlu0 %v1987_v3, %s1662_s20 }
 0x18a   : > { %828 = vrot.lane.b32.xlu1 %v1947_v56, %s1663_s24  ;;  %759 = vrot.lane.b32.xlu0 %v1995_v6, %s1662_s20 }
 0x18e   : > { %966 = vrot.lane.b32.xlu1 %v1941_v54, %s1664_s19  ;;  %897 = vrot.lane.b32.xlu0 %v1987_v3, %s1665_s6 }
 0x192   : > { %974 = vrot.lane.b32.xlu1 %v1947_v56, %s1664_s19  ;;  %905 = vrot.lane.b32.xlu0 %v1995_v6, %s1665_s6  ;;  %s348_s6 = scalar_lea.vmem [#allocation8], %s1364_s15 }
 0x196   : > { %530 = vrot.lane.b32.xlu1 %v1987_v3, %s1660_s21  ;;  %1043 = vrot.lane.b32.xlu0 %v1987_v3, %s1666_s11 }
 0x19a   : > { %538 = vrot.lane.b32.xlu1 %v1995_v6, %s1660_s21  ;;  %1051 = vrot.lane.b32.xlu0 %v1995_v6, %s1666_s11  ;;  %s1266_s11 = sshll.u32 %s348_s6, 4  ;;  %s2616_s11 = int_to_ptr.vmem [resolvable:$true] %s1266_s11 }
 0x19b   : > { %s1575_s23 = scalar_lea.vmem %s2616_s11, 512 }
 0x19c   : > { %v2036_v13 = vpop.permute.xlu1 %599  ;;  %v525_v14 = vpop.permute.xlu0 %524  ;;  %p1576_p11 = scmp.ne.s32.totalorder %s2616_s11, %s1575_s23 }
 0x19e   : > { %678 = vrot.lane.b32.xlu1 %v1987_v3, %s1661_s22  ;;  %1119 = vperm.xlu0 %1487, %v1111_v12   ;;  %p1577_p1 = pnand %p1576_p11, %p2769_p0 }
 0x1a0   : > { %v2040_v15 = vpop.permute.xlu1 %607  ;;  %v533_v16 = vpop.permute.xlu0 %532  ;;  %p1578_p2 = pneg %p1577_p1 }
 0x1a2   : > { %686 = vrot.lane.b32.xlu1 %v1995_v6, %s1661_s22 }
 0x1a4   : > { %v673_v18 = vpop.permute.xlu1 %672  ;;  %v681_v19 = vpop.permute.xlu0 %680 }
 0x1a6   : > { %824 = vrot.lane.b32.xlu1 %v1987_v3, %s1663_s24 }
 0x1a8   : > { %v2048_v21 = vpop.permute.xlu1 %745  ;;  %v2050_v22 = vpop.permute.xlu0 %826 }
 0x1aa   : > { %832 = vrot.lane.b32.xlu1 %v1995_v6, %s1663_s24  ;;  %s1385_s24 = sshll.u32 %s1734_s9, 9 }
 0x1ab   : > { %s2614_s15 = scalar_lea.hbm %s2665_s8, %s1385_s24 }
 0x1ac   : > { %v2067_v34 = vpop.permute.xlu1 %753  ;;  %v2069_v35 = vpop.permute.xlu0 %972 }
 0x1ae   : > { %970 = vrot.lane.b32.xlu1 %v1987_v3, %s1664_s19 }
 0x1b0   : > { %v819_v42 = vpop.permute.xlu1 %818  ;;  %v529_v43 = vpop.permute.xlu0 %528 }
 0x1b1   : > { %v545_v44 = vsel %vm542_vm2, %v529_v43, %v533_v16  ;;  %v547_v46 = vsel %vm542_vm2, %v525_v14, %v529_v43 }
 0x1b2   : > { %v568_v48 = vmul.f32 %v2075_v36, %v547_v46  ;;  %v569_v49 = vmul.f32 %v2078_v38, %v545_v44  ;;  %978 = vrot.lane.b32.xlu1 %v1995_v6, %s1664_s19  ;;  %v918_v36 = vsub.s32 6, %v2046_v20 }
 0x1b4   : > { %v2109_v55 = vmul.f32 %v577_v11, %v568_v48  ;;  %v585_v60 = vmul.f32 %v577_v11, %v569_v49  ;;  %v2111_v62 = vpop.permute.xlu1 %891  ;;  %v537_v63 = vpop.permute.xlu0 %536 }
 0x1b5   : > { %v543_v0 = vsel %vm542_vm2, %v533_v16, %v537_v63  ;;  %v549_v1 = vsel %vm542_vm2, %v537_v63, %v525_v14  ;;  %v845_v63 = vsub.s32 5, %v2046_v20 }
 0x1b6   : > { %v2117_v4 = vadd.f32 %v585_v60, %v518_v53  ;;  %v567_v12 = vmul.f32 %v2099_v50, %v549_v1  ;;  %v570_v17 = vmul.f32 %v2102_v51, %v543_v0  ;;  %1114 = vperm.xlu1 %1489, %v1110_v52   ;;  %v699_v60 = vsub.s32 2, %v2046_v20 }
 0x1b7   : > { %v2176_v10 = vrot.slane %v2083_v40, %v845_v63  ;;  %v2187_v29 = vrot.slane %v2088_v41, %v845_v63 }
 0x1b8   : > { %v583_v16 = vmul.f32 %v577_v11, %v567_v12  ;;  %v2127_v43 = vmul.f32 %v577_v11, %v570_v17  ;;  %v2129_v14 = vpop.permute.xlu1 %899  ;;  %v677_v44 = vpop.permute.xlu0 %676  ;;  %v517_v17 = vmul.f32 %v1949_v57, %v1905_v45  ;;  %v2179_v45 = vrot.slane %v2060_v32, %v845_v63 }
 0x1b9   : > { %v691_v46 = vsel %vm688_vm3, %v677_v44, %v681_v19  ;;  %v693_v48 = vsel %vm688_vm3, %v673_v18, %v677_v44  ;;  %v2167_v44 = vrot.slane %v2065_v33, %v699_v60 }
 0x1ba   : > { %v2135_v49 = vadd.f32 %v583_v16, %v516_v31  ;;  %1154 = vperm.xlu1 %1489, %v1151_v39   ;;  %v519_v39 = vmul.f32 %v1949_v57, %v1911_v47  ;;  %v2163_v31 = vrot.slane %v2060_v32, %v699_v60  ;;  %v991_v16 = vsub.s32 7, %v2046_v20 }
 0x1bb   : > { %2731 = vst [vmem:[#allocation33_spill] sm:$0xff] %v2167_v44  ;;  %v2184_v57 = vrot.slane %v2065_v33, %v845_v63  ;;  %v715_v50 = vmul.f32 %v2167_v44, %v691_v46 }
 0x1bc   : > { %v2137_v52 = vpop.permute.xlu1 %964  ;;  %v685_v53 = vpop.permute.xlu0 %684  ;;  %2730 = vst [vmem:[#allocation32_spill] sm:$0xff] %v2163_v31  ;;  %v2205_v63 = vrot.slane %v2083_v40, %v991_v16  ;;  %v2208_v51 = vrot.slane %v2060_v32, %v991_v16  ;;  %v2221_v59 = vrot.slane %v2088_v41, %v991_v16  ;;  %v714_v38 = vmul.f32 %v2163_v31, %v693_v48 }
 0x1bd   : > { %v689_v37 = vsel %vm688_vm3, %v681_v19, %v685_v53  ;;  %v695_v11 = vsel %vm688_vm3, %v685_v53, %v673_v18  ;;  %v626_v18 = vsub.s32 1, %v2046_v20  ;;  %v2170_v53 = vrot.slane %v2083_v40, %v699_v60 }
 0x1be   : > { %2735 = vst [vmem:[#allocation37_spill] sm:$0xff] %v2221_v59 }
 0x1bf   : > { %v2198_v25 = vrot.slane %v2060_v32, %v626_v18  ;;  %v2201_v5 = vrot.slane %v2065_v33, %v626_v18  ;;  %v2212_v61 = vrot.slane %v2083_v40, %v626_v18 }
 0x1c0   : > { %v2146_v0 = vpop.permute.xlu1 %1037  ;;  %v823_v1 = vpop.permute.xlu0 %822 }
 0x1c1   : > { %2729 = vst [vmem:[#allocation31_spill] sm:$0xff] %v2146_v0  ;;  %v2151_v12 = vsel %vm834_vm4, %v823_v1, %v2050_v22  ;;  %v2155_v19 = vsel %vm834_vm4, %v819_v42, %v823_v1  ;;  %v2173_v1 = vrot.slane %v2088_v41, %v699_v60  ;;  %2733 = vst [vmem:[#allocation35_spill] sm:$0xff] %v2198_v25 }
 0x1c2   : > { %2734 = vst [vmem:[#allocation36_spill] sm:$0xff] %v2201_v5  ;;  %v2261_v0 = vrot.slane %v2083_v40, %v918_v36 }
 0x1c3   : > { %2732 = vst [vmem:[#allocation34_spill] sm:$0xff] %v2173_v1  ;;  %v716_v58 = vmul.f32 %v2173_v1, %v689_v37  ;;  %v731_v37 = vmul.f32 %v1981_v2, %v715_v50 }
 0x1c4   : > { %v2181_v47 = vpop.permute.xlu1 %1045  ;;  %v831_v27 = vpop.permute.xlu0 %830 }
 0x1c5   : > { %v835_v60 = vsel %vm834_vm4, %v2050_v22, %v831_v27  ;;  %v2195_v8 = vsel %vm834_vm4, %v831_v27, %v819_v42  ;;  %v772_v22 = vsub.s32 3, %v2046_v20  ;;  %v2215_v27 = vrot.slane %v2088_v41, %v626_v18 }
 0x1c6   : > { %v2218_v42 = vrot.slane %v2065_v33, %v991_v16  ;;  %v732_v1 = vmul.f32 %v1981_v2, %v716_v58 }
 0x1c7   : > { %v2244_v44 = vrot.slane %v2060_v32, %v772_v22  ;;  %v2247_v31 = vrot.slane %v2065_v33, %v772_v22  ;;  %v2252_v54 = vrot.slane %v2083_v40, %v772_v22  ;;  %v2255_v30 = vrot.slane %v2088_v41, %v772_v22 }
 0x1c8   : > { %v604_v6 = vpop.permute.xlu1 %603  ;;  %v969_v3 = vpop.permute.xlu0 %968 }
 0x1c9   : > { %v618_v18 = vsel %vm615_vm5, %v604_v6, %v2040_v15  ;;  %v620_v56 = vsel %vm615_vm5, %v2036_v13, %v604_v6  ;;  %v2236_v48 = vsel %vm980_vm6, %v969_v3, %v2069_v35  ;;  %v985_v46 = vsel %vm980_vm6, %v2137_v52, %v969_v3 }
 0x1ca   : > { %v641_v16 = vmul.f32 %v2198_v25, %v620_v56  ;;  %v642_v20 = vmul.f32 %v2201_v5, %v618_v18  ;;  %v713_v6 = vmul.f32 %v2170_v53, %v695_v11  ;;  %v592_v56 = vadd.f32 %v2109_v55, %v517_v17 }
 0x1cb   : > { %v730_v11 = vmul.f32 %v1981_v2, %v714_v38  ;;  %v594_v38 = vadd.f32 %v2127_v43, %v519_v39  ;;  %v861_v43 = vmul.f32 %v2184_v57, %v835_v60  ;;  %v862_v60 = vmul.f32 %v2187_v29, %v2195_v8 }
 0x1cc   : > { %v657_v3 = vmul.f32 %v1867_v24, %v641_v16  ;;  %v658_v18 = vmul.f32 %v1867_v24, %v642_v20  ;;  %v612_v5 = vpop.permute.xlu1 %611  ;;  %v977_v25 = vpop.permute.xlu0 %976  ;;  %v729_v50 = vmul.f32 %v1981_v2, %v713_v6 }
 0x1cd   : > { %v616_v22 = vsel %vm615_vm5, %v2040_v15, %v612_v5  ;;  %v622_v55 = vsel %vm615_vm5, %v612_v5, %v2036_v13  ;;  %v2279_v15 = vrot.slane %v2060_v32, %v918_v36 }
 0x1ce   : > { %v665_v17 = vadd.f32 %v657_v3, %v592_v56  ;;  %v666_v16 = vadd.f32 %v658_v18, %v2117_v4  ;;  %v640_v20 = vmul.f32 %v2212_v61, %v622_v55  ;;  %v643_v40 = vmul.f32 %v2215_v27, %v616_v22 }
 0x1cf   : > { %v860_v22 = vmul.f32 %v2179_v45, %v2151_v12  ;;  %v859_v12 = vmul.f32 %v2176_v10, %v2155_v19 }
 0x1d0   : > { %v656_v5 = vmul.f32 %v1867_v24, %v640_v20  ;;  %v659_v13 = vmul.f32 %v1867_v24, %v643_v40  ;;  %v750_v4 = vpop.permute.xlu1 %749  ;;  %v738_v56 = vadd.f32 %v730_v11, %v665_v17  ;;  %v739_v3 = vadd.f32 %v731_v37, %v666_v16  ;;  %v2283_v18 = vpop.permute.xlu0 %601 }
 0x1d1   : > { %v764_v58 = vsel %vm761_vm7, %v750_v4, %v2067_v34  ;;  %v766_v2 = vsel %vm761_vm7, %v2048_v21, %v750_v4  ;;  %v2302_v11 = vrot.slane %v2065_v33, %v918_v36  ;;  %v2305_v37 = vrot.slane %v2088_v41, %v918_v36 }
 0x1d2   : > { %v664_v24 = vadd.f32 %v656_v5, %v2135_v49  ;;  %v667_v32 = vadd.f32 %v659_v13, %v594_v38  ;;  %v787_v39 = vmul.f32 %v2244_v44, %v766_v2  ;;  %v788_v6 = vmul.f32 %v2247_v31, %v764_v58 }
 0x1d3   : > { %v876_v19 = vmul.f32 %v2001_v7, %v860_v22  ;;  %v877_v38 = vmul.f32 %v2001_v7, %v861_v43  ;;  %v878_v13 = vmul.f32 %v2001_v7, %v862_v60  ;;  %v1005_v4 = vmul.f32 %v2205_v63, %v985_v46 }
 0x1d4   : > { %v803_v55 = vmul.f32 %v1871_v26, %v787_v39  ;;  %v804_v49 = vmul.f32 %v1871_v26, %v788_v6  ;;  %v758_v17 = vpop.permute.xlu1 %757  ;;  %v737_v16 = vadd.f32 %v729_v50, %v664_v24  ;;  %v740_v20 = vadd.f32 %v732_v1, %v667_v32  ;;  %v2309_v40 = vpop.permute.xlu0 %609 }
 0x1d5   : > { %v762_v8 = vsel %vm761_vm7, %v2067_v34, %v758_v17  ;;  %v768_v33 = vsel %vm761_vm7, %v758_v17, %v2048_v21  ;;  %v875_v50 = vmul.f32 %v2001_v7, %v859_v12  ;;  %v1006_v22 = vmul.f32 %v2208_v51, %v2236_v48 }
 0x1d6   : > { %v811_v36 = vadd.f32 %v803_v55, %v738_v56  ;;  %v812_v41 = vadd.f32 %v804_v49, %v739_v3  ;;  %v786_v5 = vmul.f32 %v2252_v54, %v768_v33  ;;  %v789_v1 = vmul.f32 %v2255_v30, %v762_v8 }
 0x1d7   : > { %v981_v2 = vsel %vm980_vm6, %v2069_v35, %v977_v25  ;;  %v987_v7 = vsel %vm980_vm6, %v977_v25, %v2137_v52  ;;  %v1021_v35 = vmul.f32 %v2017_v9, %v1005_v4  ;;  %v1022_v6 = vmul.f32 %v2017_v9, %v1006_v22 }
 0x1d8   : > { %v802_v34 = vmul.f32 %v1871_v26, %v786_v5  ;;  %v805_v43 = vmul.f32 %v1871_v26, %v789_v1  ;;  %v896_v21 = vpop.permute.xlu1 %895  ;;  %v884_v56 = vadd.f32 %v876_v19, %v811_v36  ;;  %v2328_v3 = vpop.permute.xlu0 %747  ;;  %v885_v58 = vadd.f32 %v877_v38, %v812_v41  ;;  %v2364_v41 = vld [vmem:[%s2662_s5 + $0x20] ss:$0 sm:$0xff]  ;;  %v2369_v5 = vld [vmem:[%s2662_s5 + $0x28] ss:$0 sm:$0xff] }
 0x1d9   : > { %v910_v48 = vsel %vm907_vm8, %v896_v21, %v2129_v14  ;;  %v912_v26 = vsel %vm907_vm8, %v2111_v62, %v896_v21  ;;  %v1007_v17 = vmul.f32 %v2218_v42, %v981_v2  ;;  %v2736_v21 = vld [vmem:[#allocation31_spill] sm:$0xff] }
 0x1da   : > { %v810_v46 = vadd.f32 %v802_v34, %v737_v16  ;;  %v813_v24 = vadd.f32 %v805_v43, %v740_v20  ;;  %v932_v32 = vmul.f32 %v2261_v0, %v912_v26  ;;  %v933_v39 = vmul.f32 %v2279_v15, %v910_v48  ;;  %v2388_v26 = vld [vmem:[%s2662_s5 + $0x30] ss:$0 sm:$0xff] }
 0x1db   : > { %v1008_v16 = vmul.f32 %v2221_v59, %v987_v7  ;;  %v1023_v22 = vmul.f32 %v2017_v9, %v1007_v17  ;;  %v2754_v59 = vld [vmem:[#allocation30_spill] sm:$0xff] }
 0x1dc   : > { %v883_v25 = vadd.f32 %v875_v50, %v810_v46  ;;  %v948_v52 = vmul.f32 %v1875_v28, %v932_v32  ;;  %v949_v12 = vmul.f32 %v1875_v28, %v933_v39  ;;  %v904_v60 = vpop.permute.xlu1 %903  ;;  %v886_v55 = vadd.f32 %v878_v13, %v813_v24  ;;  %v2349_v49 = vpop.permute.xlu0 %755  ;;  %v2737_v46 = vld [vmem:[#allocation16_spill] sm:$0xff] }
 0x1dd   : > { %v908_v20 = vsel %vm907_vm8, %v2129_v14, %v904_v60  ;;  %v914_v19 = vsel %vm907_vm8, %v904_v60, %v2111_v62  ;;  %v1024_v34 = vmul.f32 %v2017_v9, %v1008_v16  ;;  %v2393_v9 = vld [vmem:[%s2662_s5 + $0x38] ss:$0 sm:$0xff] }
 0x1de   : > { %v956_v38 = vadd.f32 %v948_v52, %v883_v25  ;;  %v957_v8 = vadd.f32 %v949_v12, %v884_v56  ;;  %v934_v33 = vmul.f32 %v2302_v11, %v908_v20  ;;  %v935_v36 = vmul.f32 %v2305_v37, %v914_v19 }
 0x1e0   : > { %v950_v14 = vmul.f32 %v1875_v28, %v934_v33  ;;  %v951_v62 = vmul.f32 %v1875_v28, %v935_v36  ;;  %v1042_v1 = vpop.permute.xlu1 %1041  ;;  %v1029_v50 = vadd.f32 %v1021_v35, %v956_v38  ;;  %v1030_v13 = vadd.f32 %v1022_v6, %v957_v8  ;;  %v2373_v4 = vpop.permute.xlu0 %893 }
 0x1e1   : > { %v1056_v43 = vsel %vm1053_vm9, %v1042_v1, %v2181_v47  ;;  %v1058_v56 = vsel %vm1053_vm9, %v2736_v21, %v1042_v1 }
 0x1e2   : > { %v958_v2 = vadd.f32 %v950_v14, %v885_v58  ;;  %v959_v7 = vadd.f32 %v951_v62, %v886_v55  ;;  %v1078_v28 = vmul.f32 %v2364_v41, %v1058_v56  ;;  %v1079_v48 = vmul.f32 %v2369_v5, %v1056_v43 }
 0x1e4   : > { %v1094_v24 = vmul.f32 %v2737_v46, %v1078_v28  ;;  %v1095_v32 = vmul.f32 %v2737_v46, %v1079_v48  ;;  %v1050_v58 = vpop.permute.xlu1 %1049  ;;  %v1031_v39 = vadd.f32 %v1023_v22, %v958_v2  ;;  %v1032_v35 = vadd.f32 %v1024_v34, %v959_v7  ;;  %v2397_v6 = vpop.permute.xlu0 %901 }
 0x1e5   : > { %v1054_v25 = vsel %vm1053_vm9, %v2181_v47, %v1050_v58  ;;  %v1060_v52 = vsel %vm1053_vm9, %v1050_v58, %v2736_v21 }
 0x1e6   : > { %v2405_v12 = vadd.f32 %v1094_v24, %v1029_v50  ;;  %v2407_v60 = vadd.f32 %v1095_v32, %v1030_v13  ;;  %v1080_v55 = vmul.f32 %v2388_v26, %v1054_v25  ;;  %v1081_v17 = vmul.f32 %v2393_v9, %v1060_v52  ;;  %v2742_v24 = vld [vmem:[#allocation17_spill] sm:$0xff]  ;;  %v2743_v32 = vld [vmem:[#allocation19_spill] sm:$0xff] }
 0x1e7   : > { %v520_v58 = vmul.f32 %v2743_v32, %v2742_v24  ;;  %v2745_v52 = vld [vmem:[#allocation35_spill] sm:$0xff] }
 0x1e8   : > { %2738 = vst [vmem:[#allocation31_spill] sm:$0xff] %v2405_v12  ;;  %2739 = vst [vmem:[#allocation16_spill] sm:$0xff] %v2407_v60  ;;  %v1096_v16 = vmul.f32 %v2737_v46, %v1080_v55  ;;  %v1097_v20 = vmul.f32 %v2737_v46, %v1081_v17  ;;  %v527_v19 = vpop.permute.xlu1 %526  ;;  %v2413_v38 = vpop.permute.xlu0 %1039  ;;  %v2752_v60 = vld [vmem:[#allocation20_spill] sm:$0xff] }
 0x1ea   : > { %v2415_v47 = vadd.f32 %v1096_v16, %v1031_v39  ;;  %v2417_v8 = vadd.f32 %v1097_v20, %v1032_v35  ;;  %v2744_v35 = vld [vmem:[#allocation18_spill] sm:$0xff]  ;;  %v2747_v20 = vld [vmem:[#allocation36_spill] sm:$0xff] }
 0x1eb   : > { %v522_v25 = vmul.f32 %v2743_v32, %v2744_v35 }
 0x1ec   : > { %2740 = vst [vmem:[#allocation38_spill] sm:$0xff] %v2415_v47  ;;  %2741 = vst [vmem:[#allocation39_spill] sm:$0xff] %v2417_v8  ;;  %v535_v33 = vpop.permute.xlu1 %534  ;;  %v2419_v36 = vpop.permute.xlu0 %1047 }
 0x1f0   : > { %v2421_v14 = vpop.permute.xlu1 %674  ;;  %v606_v62 = vpop.permute.xlu0 %605 }
 0x1f1   : > { %v621_v2 = vsel %vm615_vm5, %v2283_v18, %v606_v62  ;;  %v619_v28 = vsel %vm615_vm5, %v606_v62, %v2309_v40 }
 0x1f2   : > { %v645_v55 = vmul.f32 %v2745_v52, %v621_v2  ;;  %v646_v62 = vmul.f32 %v2747_v20, %v619_v28  ;;  %v2750_v20 = vld [vmem:[#allocation29_spill] sm:$0xff] }
 0x1f4   : > { %v2423_v1 = vpop.permute.xlu1 %682  ;;  %v614_v13 = vpop.permute.xlu0 %613 }
 0x1f5   : > { %v623_v48 = vsel %vm615_vm5, %v614_v13, %v2283_v18  ;;  %v617_v39 = vsel %vm615_vm5, %v2309_v40, %v614_v13  ;;  %v2746_v18 = vld [vmem:[#allocation27_spill] sm:$0xff] }
 0x1f6   : > { %v644_v8 = vmul.f32 %v2212_v61, %v623_v48  ;;  %v647_v2 = vmul.f32 %v2215_v27, %v617_v39  ;;  %v2748_v48 = vld [vmem:[#allocation22_spill] sm:$0xff] }
 0x1f8   : > { %v2425_v50 = vpop.permute.xlu1 %820  ;;  %v752_v34 = vpop.permute.xlu0 %751 }
 0x1f9   : > { %v767_v17 = vsel %vm761_vm7, %v2328_v3, %v752_v34  ;;  %v765_v24 = vsel %vm761_vm7, %v752_v34, %v2349_v49  ;;  %v521_v34 = vmul.f32 %v2743_v32, %v2748_v48 }
 0x1fa   : > { %v792_v39 = vmul.f32 %v2247_v31, %v765_v24 }
 0x1fc   : > { %v2427_v22 = vpop.permute.xlu1 %828  ;;  %v760_v56 = vpop.permute.xlu0 %759 }
 0x1fd   : > { %v769_v52 = vsel %vm761_vm7, %v760_v56, %v2328_v3  ;;  %v763_v3 = vsel %vm761_vm7, %v2349_v49, %v760_v56  ;;  %v2755_v56 = vld [vmem:[#allocation23_spill] sm:$0xff] }
 0x1fe   : > { %v790_v48 = vmul.f32 %v2252_v54, %v769_v52 }
 0x200   : > { %v2429_v43 = vpop.permute.xlu1 %966  ;;  %v898_v40 = vpop.permute.xlu0 %897 }
 0x204   : > { %v2431_v21 = vpop.permute.xlu1 %974  ;;  %v906_v54 = vpop.permute.xlu0 %905 }
 0x208   : > { %v531_v7 = vpop.permute.xlu1 %530 }
 0x209   : > { %v548_v46 = vsel %vm542_vm2, %v527_v19, %v531_v7  ;;  %v546_v13 = vsel %vm542_vm2, %v531_v7, %v535_v33  ;;  %v791_v7 = vmul.f32 %v2244_v44, %v767_v17 }
 0x20a   : > { %v572_v16 = vmul.f32 %v2746_v18, %v548_v46  ;;  %v2749_v46 = vld [vmem:[#allocation24_spill] sm:$0xff] }
 0x20b   : > { %v523_v18 = vmul.f32 %v2743_v32, %v2749_v46  ;;  %v806_v46 = vmul.f32 %v2755_v56, %v790_v48 }
 0x20c   : > { %v539_v35 = vpop.permute.xlu1 %538 }
 0x20d   : > { %v544_v28 = vsel %vm542_vm2, %v535_v33, %v539_v35  ;;  %v550_v61 = vsel %vm542_vm2, %v539_v35, %v527_v19  ;;  %v2751_v33 = vld [vmem:[#allocation28_spill] sm:$0xff]  ;;  %v588_v19 = vmul.f32 %v2752_v60, %v572_v16  ;;  %v2753_v35 = vld [vmem:[#allocation21_spill] sm:$0xff]  ;;  %v807_v16 = vmul.f32 %v2755_v56, %v791_v7 }
 0x20e   : > { %v571_v27 = vmul.f32 %v2750_v20, %v550_v61  ;;  %v573_v47 = vmul.f32 %v2751_v33, %v546_v13  ;;  %v661_v12 = vmul.f32 %v2753_v35, %v645_v55  ;;  %v574_v32 = vmul.f32 %v2754_v59, %v544_v28  ;;  %v2756_v13 = vld [vmem:[#allocation32_spill] sm:$0xff]  ;;  %v2758_v33 = vld [vmem:[#allocation13_spill] sm:$0xff] }
 0x20f   : > { %v662_v61 = vmul.f32 %v2753_v35, %v646_v62  ;;  %v660_v31 = vmul.f32 %v2753_v35, %v644_v8  ;;  %v663_v24 = vmul.f32 %v2753_v35, %v647_v2  ;;  %v793_v55 = vmul.f32 %v2255_v30, %v763_v3  ;;  %v2757_v3 = vld [vmem:[#allocation33_spill] sm:$0xff] }
 0x210   : > { %v587_v44 = vmul.f32 %v2752_v60, %v571_v27  ;;  %v679_v17 = vpop.permute.xlu1 %678  ;;  %v2500_v62 = vmul.f32 %v2755_v56, %v792_v39  ;;  %v913_v8 = vsel %vm907_vm8, %v2373_v4, %v898_v40  ;;  %v589_v2 = vmul.f32 %v2752_v60, %v573_v47 }
 0x211   : > { %v694_v49 = vsel %vm688_vm3, %v2421_v14, %v679_v17  ;;  %v692_v59 = vsel %vm688_vm3, %v679_v17, %v2423_v1  ;;  %v596_v28 = vadd.f32 %v588_v19, %v521_v34  ;;  %v911_v30 = vsel %vm907_vm8, %v898_v40, %v2397_v6 }
 0x212   : > { %v718_v52 = vmul.f32 %v2756_v13, %v694_v49  ;;  %v590_v7 = vmul.f32 %v2752_v60, %v574_v32  ;;  %v595_v20 = vadd.f32 %v587_v44, %v520_v58  ;;  %v719_v39 = vmul.f32 %v2757_v3, %v692_v59  ;;  %v2759_v58 = vld [vmem:[#allocation34_spill] sm:$0xff]  ;;  %v1044_v49 = vpop.permute.xlu0 %1043 }
 0x213   : > { %v809_v34 = vmul.f32 %v2755_v56, %v793_v55  ;;  %v936_v40 = vmul.f32 %v2261_v0, %v913_v8  ;;  %v937_v48 = vmul.f32 %v2279_v15, %v911_v30  ;;  %v909_v32 = vsel %vm907_vm8, %v2397_v6, %v906_v54 }
 0x214   : > { %v687_v27 = vpop.permute.xlu1 %686  ;;  %v734_v35 = vmul.f32 %v2758_v33, %v718_v52  ;;  %v597_v44 = vadd.f32 %v589_v2, %v522_v25  ;;  %v598_v56 = vadd.f32 %v590_v7, %v523_v18  ;;  %v668_v55 = vadd.f32 %v660_v31, %v595_v20  ;;  %v2760_v31 = vld [vmem:[#allocation25_spill] sm:$0xff]  ;;  %v2761_v7 = vld [vmem:[#allocation14_spill] sm:$0xff] }
 0x215   : > { %v690_v17 = vsel %vm688_vm3, %v2423_v1, %v687_v27  ;;  %v696_v47 = vsel %vm688_vm3, %v687_v27, %v2421_v14  ;;  %v669_v1 = vadd.f32 %v661_v12, %v596_v28  ;;  %v915_v14 = vsel %vm907_vm8, %v906_v54, %v2373_v4 }
 0x216   : > { %v717_v60 = vmul.f32 %v2170_v53, %v696_v47  ;;  %v720_v19 = vmul.f32 %v2759_v58, %v690_v17  ;;  %v735_v59 = vmul.f32 %v2758_v33, %v719_v39  ;;  %v952_v54 = vmul.f32 %v2760_v31, %v936_v40 }
 0x217   : > { %v742_v13 = vadd.f32 %v734_v35, %v669_v1  ;;  %v938_v52 = vmul.f32 %v2302_v11, %v909_v32  ;;  %v939_v8 = vmul.f32 %v2305_v37, %v915_v14  ;;  %v670_v2 = vadd.f32 %v662_v61, %v597_v44  ;;  %v1052_v11 = vpop.permute.xlu0 %1051 }
 0x218   : > { %v733_v0 = vmul.f32 %v2758_v33, %v717_v60  ;;  %v825_v53 = vpop.permute.xlu1 %824  ;;  %v736_v12 = vmul.f32 %v2758_v33, %v720_v19  ;;  %v671_v28 = vadd.f32 %v663_v24, %v598_v56  ;;  %v953_v39 = vmul.f32 %v2760_v31, %v937_v48 }
 0x219   : > { %v838_v15 = vsel %vm834_vm4, %v825_v53, %v2427_v22  ;;  %v840_v6 = vsel %vm834_vm4, %v2425_v50, %v825_v53  ;;  %v815_v33 = vadd.f32 %v807_v16, %v742_v13  ;;  %v743_v37 = vadd.f32 %v735_v59, %v670_v2  ;;  %v2762_v53 = vld [vmem:[#allocation15_spill] sm:$0xff] }
 0x21a   : > { %v741_v4 = vadd.f32 %v733_v0, %v668_v55  ;;  %v863_v25 = vmul.f32 %v2176_v10, %v840_v6  ;;  %v864_v18 = vmul.f32 %v2179_v45, %v838_v15  ;;  %v744_v61 = vadd.f32 %v736_v12, %v671_v28  ;;  %v2763_v12 = vld [vmem:[#allocation37_spill] sm:$0xff] }
 0x21b   : > { %v954_v35 = vmul.f32 %v2760_v31, %v938_v52  ;;  %v955_v17 = vmul.f32 %v2760_v31, %v939_v8  ;;  %v1061_v58 = vsel %vm1053_vm9, %v1052_v11, %v2413_v38  ;;  %v816_v32 = vadd.f32 %v2500_v62, %v743_v37  ;;  %v1120_v28 = vpop.permute.xlu0 %1119 }
 0x21c   : > { %v814_v30 = vadd.f32 %v806_v46, %v741_v4  ;;  %v879_v20 = vmul.f32 %v2761_v7, %v863_v25  ;;  %v880_v27 = vmul.f32 %v2761_v7, %v864_v18  ;;  %v833_v3 = vpop.permute.xlu1 %832  ;;  %v817_v44 = vadd.f32 %v809_v34, %v744_v61  ;;  %v2764_v25 = vld [vmem:[#allocation26_spill] sm:$0xff]  ;;  %v2765_v61 = vld [vmem:[#allocation31_spill] sm:$0xff] }
 0x21d   : > { %v836_v10 = vsel %vm834_vm4, %v2427_v22, %v833_v3  ;;  %v842_v45 = vsel %vm834_vm4, %v833_v3, %v2425_v50  ;;  %v1057_v22 = vsel %vm1053_vm9, %v1044_v49, %v2419_v36  ;;  %v1059_v50 = vsel %vm1053_vm9, %v2413_v38, %v1044_v49 }
 0x21e   : > { %v865_v24 = vmul.f32 %v2184_v57, %v836_v10  ;;  %v866_v46 = vmul.f32 %v2187_v29, %v842_v45  ;;  %v887_v16 = vadd.f32 %v879_v20, %v814_v30  ;;  %v888_v47 = vadd.f32 %v880_v27, %v815_v33 }
 0x21f   : > { %v1055_v29 = vsel %vm1053_vm9, %v2419_v36, %v1052_v11  ;;  %v1082_v36 = vmul.f32 %v2364_v41, %v1059_v50  ;;  %v1083_v49 = vmul.f32 %v2369_v5, %v1057_v22  ;;  %v1085_v34 = vmul.f32 %v2393_v9, %v1061_v58 }
 0x220   : > { %v881_v40 = vmul.f32 %v2761_v7, %v865_v24  ;;  %v882_v57 = vmul.f32 %v2761_v7, %v866_v46  ;;  %v971_v60 = vpop.permute.xlu1 %970  ;;  %v960_v38 = vadd.f32 %v952_v54, %v887_v16  ;;  %v961_v56 = vadd.f32 %v953_v39, %v888_v47  ;;  %v2766_v46 = vld [vmem:[#allocation16_spill] sm:$0xff]  ;;  %v2768_v47 = vld [vmem:[#allocation39_spill] sm:$0xff] }
 0x221   : > { %v984_v19 = vsel %vm980_vm6, %v971_v60, %v2431_v21  ;;  %v986_v48 = vsel %vm980_vm6, %v2429_v43, %v971_v60  ;;  %v1084_v62 = vmul.f32 %v2388_v26, %v1055_v29  ;;  %v1098_v18 = vmul.f32 %v2764_v25, %v1082_v36 }
 0x222   : > { %v1009_v1 = vmul.f32 %v2205_v63, %v986_v48  ;;  %v1010_v14 = vmul.f32 %v2208_v51, %v984_v19  ;;  %v889_v55 = vadd.f32 %v881_v40, %v816_v32  ;;  %v890_v0 = vadd.f32 %v882_v57, %v817_v44 }
 0x223   : > { %v1099_v26 = vmul.f32 %v2764_v25, %v1083_v49  ;;  %v1100_v23 = vmul.f32 %v2764_v25, %v1084_v62 }
 0x224   : > { %v1025_v59 = vmul.f32 %v2762_v53, %v1009_v1  ;;  %v1026_v13 = vmul.f32 %v2762_v53, %v1010_v14  ;;  %v979_v15 = vpop.permute.xlu1 %978  ;;  %v962_v31 = vadd.f32 %v954_v35, %v889_v55  ;;  %v963_v9 = vadd.f32 %v955_v17, %v890_v0  ;;  %v2767_v17 = vld [vmem:[#allocation38_spill] sm:$0xff]  ;;  %v1146_v55 = vld [vmem:[#allocation7] sm:$0xf] }
 0x225   : > { %v982_v51 = vsel %vm980_vm6, %v2431_v21, %v979_v15  ;;  %v988_v63 = vsel %vm980_vm6, %v979_v15, %v2429_v43  ;;  %v1101_v43 = vmul.f32 %v2764_v25, %v1085_v34 }
 0x226   : > { %v1033_v41 = vadd.f32 %v1025_v59, %v960_v38  ;;  %v1034_v5 = vadd.f32 %v1026_v13, %v961_v56  ;;  %v1011_v6 = vmul.f32 %v2218_v42, %v982_v51  ;;  %v1012_v4 = vmul.f32 %v2763_v12, %v988_v63  ;;  %v1491_v51 = vld [vmem:[%s1837_s17] sm:$0xff] }
 0x228   : > { %v1027_v54 = vmul.f32 %v2762_v53, %v1011_v6  ;;  %v1028_v21 = vmul.f32 %v2762_v53, %v1012_v4  ;;  %v1106_v52 = vadd.f32 %v1098_v18, %v1033_v41  ;;  %v1107_v8 = vadd.f32 %v1099_v26, %v1034_v5  ;;  %v1492_v41 = vld [vmem:[%s1837_s17 + $0x10] sm:$0xff]  ;;  %v1493_v18 = vld [vmem:[%s1837_s17 + $0x8] sm:$0xff] }
 0x22a   : > { %v1035_v2 = vadd.f32 %v1027_v54, %v962_v31  ;;  %v1036_v42 = vadd.f32 %v1028_v21, %v963_v9  ;;  %v1127_v20 = vadd.f32 %v1120_v28, %v1107_v8  ;;  %v1126_v27 = vadd.f32 %v1120_v28, %v1106_v52  ;;  %v1494_v31 = vld [vmem:[%s1837_s17 + $0x18] sm:$0xff]  ;;  %s1667_s17 = smov [#allocation8]  }
 0x22b   : > { %s1579_s25 = sshll.u32 %s1667_s17, 4  ;;  %s1580_s25 = int_to_ptr.vmem [resolvable:$false] %s1579_s25 }
 0x22c   : > { %v1108_v30 = vadd.f32 %v1100_v23, %v1035_v2  ;;  %v1109_v7 = vadd.f32 %v1101_v43, %v1036_v42  ;;  %v1135_v10 = vmax.f32 %v1127_v20, 0.0  ;;  %v1134_v11 = vmax.f32 %v1126_v27, 0.0  ;;  %s1581_s26 = scalar_lea.vmem %s1580_s25, 1024  ;;  %p1582_p6 = scmp.lt.s32.totalorder %s2616_s11, %s1580_s25 }
 0x22d   : > { %p1583_p12 = scmp.lt.s32.totalorder %s1581_s26, %s1575_s23 }
 0x22e   : > { %v1129_v3 = vadd.f32 %v1120_v28, %v1109_v7  ;;  %v1128_v39 = vadd.f32 %v1120_v28, %v1108_v30  ;;  %v1143_v29 = vmin.f32 %v1135_v10, 6.0  ;;  %v1142_v19 = vmin.f32 %v1134_v11, 6.0 }
 0x22f   : > { %p1584_p7 = por %p1583_p12, %p1582_p6 }
 0x230   : > { %v1137_v45 = vmax.f32 %v1129_v3, 0.0  ;;  %v1136_v37 = vmax.f32 %v1128_v39, 0.0 }
 0x231   : > { %v1115_v33 = vpop.permute.xlu1 %1114  ;;  %p1585_p9 = pnand %p1584_p7, %p1578_p2 }
 0x232   : > { %v1122_v24 = vadd.f32 %v1115_v33, %v2765_v61  ;;  %v1123_v35 = vadd.f32 %v1115_v33, %v2766_v46  ;;  %v1124_v16 = vadd.f32 %v1115_v33, %v2767_v17  ;;  %v1125_v22 = vadd.f32 %v1115_v33, %v2768_v47 }
 0x233   : > { %v1145_v58 = vmin.f32 %v1137_v45, 6.0  ;;  %v1144_v48 = vmin.f32 %v1136_v37, 6.0 }
 0x234   : > { %v1130_v50 = vmax.f32 %v1122_v24, 0.0  ;;  %v1131_v40 = vmax.f32 %v1123_v35, 0.0  ;;  %v1132_v57 = vmax.f32 %v1124_v16, 0.0  ;;  %v1133_v60 = vmax.f32 %v1125_v22, 0.0 }
 0x235   : > { %v1155_v0 = vpop.permute.xlu1 %1154 }
 0x236   : > { %v1138_v32 = vmin.f32 %v1130_v50, 6.0  ;;  %v1140_v44 = vmin.f32 %v1132_v57, 6.0  ;;  %v1139_v1 = vmin.f32 %v1131_v40, 6.0  ;;  %v1141_v14 = vmin.f32 %v1133_v60, 6.0 }
 0x238   : > { %v1148_v36 = vpack.c.bf16 %v1143_v29, %v1139_v1  ;;  %v1150_v49 = vpack.c.bf16 %v1145_v58, %v1141_v14  ;;  %v1147_v38 = vpack.c.bf16 %v1142_v19, %v1138_v32  ;;  %v1149_v56 = vpack.c.bf16 %v1144_v48, %v1140_v44 }
 0x23a   : > { %1175 = vmatprep.subr.bf16.mxu0 %v1148_v36  ;;  %1216 = vmatprep.subr.bf16.mxu1 %v1150_v49 }
 0x23b   : > { %1176 = vmatpush1.bf16.msra.mxu0 %v1147_v38  ;;  %1217 = vmatpush1.bf16.msra.mxu1 %v1149_v56 }
 0x23e   : > { %1377 = vmatmul.mubr.msk.bf16.vlgmr.msra.gmra.mxu0 %vm1157_vm10, %v1146_v55  ;;  %1378 = vmatmul.mubr.msk.bf16.vlgmr.msra.gmra.mxu1 %vm1157_vm10, %v1146_v55 }
 0x2fe   : > { %v1195_v53 = vpop.f32.mrf.mxu0  ;;  %v1236_v59 = vpop.f32.mrf.mxu1 }
 0x2ff   : > { %v1196_v13 = vadd.f32 %v1195_v53, %v1155_v0  ;;  %v1237_v15 = vadd.f32 %v1236_v59, %v1155_v0 }
 0x300   : > { %v1197_v62 = vpop.f32.mrf.mxu0  ;;  %v1238_v34 = vpop.f32.mrf.mxu1 }
 0x301   : > { %v1243_v63 = vadd.f32 %v1491_v51, %v1196_v13  ;;  %v1245_v5 = vadd.f32 %v1492_v41, %v1237_v15  ;;  %v1198_v6 = vadd.f32 %v1197_v62, %v1155_v0  ;;  %v1239_v12 = vadd.f32 %v1238_v34, %v1155_v0 }
 0x302   : > { %v1199_v4 = vpop.f32.mrf.mxu0  ;;  %v1240_v25 = vpop.f32.mrf.mxu1 }
 0x303   : > { %1247 = vst [vmem:[%s348_s6] sm:$0xff] %v1243_v63  ;;  %1249 = vst [vmem:[%s348_s6 + $0x10] sm:$0xff] %v1245_v5  ;;  %v1244_v26 = vadd.f32 %v1493_v18, %v1198_v6  ;;  %v1246_v9 = vadd.f32 %v1494_v31, %v1239_v12 }
 0x304   : > { %v1200_v54 = vpop.f32.mrf.mxu0  ;;  %v1241_v21 = vpop.f32.mrf.mxu1 }
 0x305   : > { %1248 = vst [vmem:[%s348_s6 + $0x8] sm:$0xff] %v1244_v26  ;;  %1250 = vst [vmem:[%s348_s6 + $0x18] sm:$0xff] %v1246_v9 }
 0x306   : > { %1588 = shalt.err (!%p1585_p9)
}
 0x307   : > { %s1589_s14 = scalar_lea.hbm %s2614_s15, 512  ;;  %s1593_s21 = scalar_lea.hbm %s2665_s8, 1024 }
 0x308   : > { %p1590_p13 = scmp.ne.s32.totalorder %s2614_s15, %s1589_s14  ;;  %p1594_p4 = scmp.lt.s32.totalorder %s2614_s15, %s2665_s8 }
 0x309   : > { %p1595_p8 = scmp.lt.s32.totalorder %s1593_s21, %s1589_s14 }
 0x30a   : > { %p1591_p5 = pnand %p1590_p13, %p2769_p0 }
 0x30b   : > { %p1596_p3 = por %p1595_p8, %p1594_p4 }
 0x30c   : > { %p1592_p10 = pneg %p1591_p5 }
 0x30e   : > { %p1597_p11 = pnand %p1596_p3, %p1592_p10 }
 0x310   : > { %1600 = shalt.err (!%p1597_p11)
}
 0x311   : > { %1396 = dma.vmem_to_hbm [thread:$0]  (%p2769_p0), %s2616_s11, 512, %s2614_s15, %s1252_s13  }
 0x312 PF: > { %s1278_s24 = sand.u32 1, %s1631_s27   ;;  %p2770_p1 = scmp.ne.s32.totalorder %s2698_s12, 0 }
 0x313   : > { %p2771_p2 = scmp.ge.s32.totalorder %s1643_s30, 2  ;;  %s1279_s6 = scalar_lea.sflag [#allocation4], %s1278_s24 }
 0x315   : > { %p1410_p6 = pnand %p2771_p2, %p2770_p1 }
 0x317   : > { %p1411_p12 = pneg %p1410_p6 }
 0x319   : > { %1626 = dma.done.wait (%p1411_p12), %s1279_s6, 512  }
 0x31a   : > { %1628 = vsyncadd (%p1411_p12), %s1279_s6, 4294966784  ;;  %s2772_s9 = sld [smem:[#allocation12_spill]]  ;;  %p22_p7 = scmp.ge.s32.totalorder %s1785_s10, 4  }
 0x31b   : > { %s2773_s27 = smov %s1635_s28  ;;  %s2774_s28 = smov %s1639_s29 }
 0x31c   : > { %s2776_s30 = smov %s1785_s10  ;;  %24 = sbr.rel (!%p22_p7) target bundleno = 9 (0x9), region = 105 }
 0x320   : > { %s2775_s29 = smov %s2772_s9 }
 0x321   :  { %1284 = vsyncpa [#allocation3], 1 }
 0x322   :  { %1286 = vsyncpa [#allocation3 + $0x1], 1 }
 0x323   :  { %1287 = vsyncpa [#allocation6], 1 }
 0x324   :  { %1288 = vsyncpa [#allocation4], 1 }
 0x325   :  { %1290 = vsyncpa [#allocation4 + $0x1], 1 }

</bundles_post_ra>
